<compile_context>
chip_gen: v7x
topology: tpu7x:2x2x1
jax: 0.10.0
libtpu: 0.0.40
codegen_flags: <defaults>
</compile_context>

<pallas_src>
import functools

import jax
import jax.numpy as jnp
from jax.experimental import pallas as pl
from jax.experimental.pallas import tpu as pltpu


# Packed bias / gamma / beta layout (all offsets 128-aligned).
_OFF = {
    "b1":  (0,    128),   # fc1 bias               (real lanes 0..49)
    "g1":  (128,  384),   # bn1 gamma, concat order: img half 0..127, txt half 128..255
    "be1": (384,  640),   # bn1 beta, same layout
    "b2":  (640,  1152),  # fc2 bias  (512, real 0..399)
    "g2":  (1152, 1664),
    "be2": (1664, 2176),
    "b3":  (2176, 2432),  # fc3 bias  (256, real 0..199)
    "g3":  (2432, 2688),
    "be3": (2688, 2944),
}
_PACKED_LEN = 2944


def _meme_kernel(img_ref, txt_ref, w1_ref, w2_ref, w3_ref, w4_ref, vec_ref,
                 b4_ref, out_ref, act1_ref, sum_ref, sq_ref, *,
                 n_real, needs_mask):
    i = pl.program_id(0)
    n_chunks = pl.num_programs(0)
    tb = img_ref.shape[0]
    bpad = act1_ref.shape[0]
    f32 = jnp.float32

    def sl(name):
        lo, hi = _OFF[name]
        return vec_ref[:, lo:hi]

    @pl.when(i == 0)
    def _init():
        sum_ref[...] = jnp.zeros_like(sum_ref)
        sq_ref[...] = jnp.zeros_like(sq_ref)

    # ---- streaming phase: fc1 on this image chunk (MXU) overlapped with the
    #      pipelined DMA of the next chunk; relu'd activations land in the
    #      resident act1 scratch, BN1 sum / sumsq accumulate as we go.
    h_img = jnp.dot(img_ref[...], w1_ref[...],
                    preferred_element_type=jnp.float32) + sl("b1")
    a_img = jnp.maximum(h_img, 0.0)                 # relu1, image half
    a_txt = jnp.maximum(txt_ref[...], 0.0)          # relu1, text half
    a = jnp.concatenate([a_img, a_txt], axis=1)     # (tb, 256), lane aligned

    if needs_mask:
        row = jax.lax.broadcasted_iota(jnp.int32, (tb, 1), 0) + i * tb
        am = a * (row < n_real).astype(f32)
    else:
        am = a
    sum_ref[...] += jnp.sum(am, axis=0, keepdims=True)
    sq_ref[...] += jnp.sum(am * a, axis=0, keepdims=True)

    start = pl.multiple_of(i * tb, tb)
    act1_ref[pl.ds(start, tb), :] = a

    # ---- epilogue: BN1 / fc2 / BN2 / fc3 / BN3 / fc4 / sigmoid, once the
    #      whole batch has streamed through.
    @pl.when(i == n_chunks - 1)
    def _epilogue():
        eps = f32(1e-5)
        inv_n = f32(1.0 / n_real)
        if needs_mask:
            rows = jax.lax.broadcasted_iota(jnp.int32, (bpad, 1), 0)
            mask = (rows < n_real).astype(f32)

        def bn_apply(t, s, ss, gamma, beta):
            # fused training-mode BatchNorm1d (biased variance, one-pass form)
            mu = s * inv_n
            var = jnp.maximum(ss * inv_n - mu * mu, 0.0)
            scale = gamma * jax.lax.rsqrt(var + eps)
            shift = beta - mu * scale
            return t * scale + shift

        def bn(t, gamma, beta):
            tm = t * mask if needs_mask else t
            s = jnp.sum(tm, axis=0, keepdims=True)
            ss = jnp.sum(tm * t, axis=0, keepdims=True)
            return bn_apply(t, s, ss, gamma, beta)

        a1 = bn_apply(act1_ref[...], sum_ref[...], sq_ref[...],
                      sl("g1"), sl("be1"))
        # fused fc2 on the 256-lane concat: (Bpad,256) @ (256,512)
        h2 = jnp.dot(a1.astype(jnp.bfloat16), w2_ref[...],
                     preferred_element_type=jnp.float32) + sl("b2")
        h2 = bn(jnp.maximum(h2, 0.0), sl("g2"), sl("be2"))
        # fc3: (Bpad,512) @ (512,256)
        h3 = jnp.dot(h2.astype(jnp.bfloat16), w3_ref[...],
                     preferred_element_type=jnp.float32) + sl("b3")
        h3 = bn(jnp.maximum(h3, 0.0), sl("g3"), sl("be3"))

        # fc4 (200 -> 1) on VPU/XLU (elementwise mul + lane reduce, skip MXU)
        logit = jnp.sum(h3 * w4_ref[...], axis=-1, keepdims=True) + b4_ref[0]

        # numerically stable sigmoid; approx reciprocal rides the EUP slot
        z = jnp.exp(-jnp.abs(logit))
        pos = jnp.minimum(pl.reciprocal(1.0 + z, approx=True), 1.0)
        out_ref[...] = jnp.where(logit >= 0.0, pos, 1.0 - pos)


def init_params(key, c_in, vocab, emb_dim):
    ks = jax.random.split(key, 10)

    def w(k, shape, scale=0.02):
        return (scale * jax.random.normal(k, shape)).astype(jnp.float32)

    return {
        # TODO(synk): the real backbone is an external pretrained CNN; this is
        # a deterministic synthetic stand-in (global-average-pool + linear).
        "wb": w(ks[0], (c_in, 2048)),
        "bb": jnp.zeros((2048,), jnp.float32),
        "emb": w(ks[1], (vocab, emb_dim), scale=1.0),
        # fc1: 2048 -> 50 (stored (in, out): x @ W + b)
        "w1": w(ks[2], (2048, 50)), "b1": w(ks[3], (50,)),
        "g1": jnp.ones((100,), jnp.float32), "be1": jnp.zeros((100,), jnp.float32),
        # fc2: 100 -> 400
        "w2": w(ks[4], (100, 400)), "b2": w(ks[5], (400,)),
        "g2": jnp.ones((400,), jnp.float32), "be2": jnp.zeros((400,), jnp.float32),
        # fc3: 400 -> 200
        "w3": w(ks[6], (400, 200)), "b3": w(ks[7], (200,)),
        "g3": jnp.ones((200,), jnp.float32), "be3": jnp.zeros((200,), jnp.float32),
        # fc4: 200 -> 1
        "w4": w(ks[8], (200, 1)), "b4": w(ks[9], (1,)),
    }


def _pad1(v, n):
    v = v.astype(jnp.float32)
    return jnp.pad(v, (0, n - v.shape[0]))


def prepare_params(p):
    """One-time padding / packing / bf16 casting of the classifier head.

    Hoisted out of the per-call forward so nothing is re-materialized per step.
    Padded weight rows/cols are zero, so padded lanes never leak downstream.
    """
    w1p = (jnp.zeros((2048, 128), jnp.float32)
           .at[:, :50].set(p["w1"])).astype(jnp.bfloat16)
    w2p = (jnp.zeros((256, 512), jnp.float32)
           .at[:50, :400].set(p["w2"][:50, :])          # image half of concat
           .at[128:178, :400].set(p["w2"][50:, :])      # text half of concat
           ).astype(jnp.bfloat16)
    w3p = (jnp.zeros((512, 256), jnp.float32)
           .at[:400, :200].set(p["w3"])).astype(jnp.bfloat16)
    w4p = jnp.zeros((1, 256), jnp.float32).at[0, :200].set(p["w4"][:, 0])
    packed = jnp.concatenate([
        _pad1(p["b1"], 128),
        _pad1(p["g1"][:50], 128), _pad1(p["g1"][50:], 128),
        _pad1(p["be1"][:50], 128), _pad1(p["be1"][50:], 128),
        _pad1(p["b2"], 512), _pad1(p["g2"], 512), _pad1(p["be2"], 512),
        _pad1(p["b3"], 256), _pad1(p["g3"], 256), _pad1(p["be3"], 256),
    ]).reshape(1, _PACKED_LEN)
    return {
        "wb": p["wb"], "bb": p["bb"], "emb": p["emb"],
        "w1p": w1p, "w2p": w2p, "w3p": w3p, "w4p": w4p,
        "vec": packed, "b4": p["b4"].astype(jnp.float32).reshape(1),
    }


def _batch_tile(b):
    if b >= 512:
        return 512
    return max(8, ((b + 7) // 8) * 8)


def _vmem_limit_bytes(bpad, tb):
    weights = 2 * ((2048 * 128 + 256 * 512 + 512 * 256) * 2
                   + (256 + _PACKED_LEN) * 4)           # double-buffer worst case
    stream = 2 * (tb * 2048 * 2 + tb * 128 * 4)         # pipelined batch chunks
    resident = bpad * 256 * 4                           # act1 scratch
    epilogue = bpad * 6 * 1024                          # a1/h2/h3 f32+bf16 temps
    est = int(1.5 * (weights + stream + resident + epilogue)) + (4 << 20)
    # never the full 64 MiB of a v7x TensorCore; 32 MiB floor is safe everywhere
    return max(32 << 20, min(est, 48 << 20))


def meme_classifier_forward(x, y, pp):
    """x: (B, C, H, W) float32 NCHW image, y: (B, S) int32 token ids."""
    B = x.shape[0]

    # --- glue (plain JAX; XLA fuses) ---
    # TODO(synk): real backbone is an external pretrained CNN; synthetic
    # stand-in = global-average-pool + linear to 2048 features.
    feat = jnp.mean(x, axis=(2, 3))                              # (B, C)
    img = (feat @ pp["wb"] + pp["bb"]).astype(jnp.bfloat16)      # (B, 2048)
    emb = jnp.take(pp["emb"], y, axis=0)                         # (B, S, 50)
    txt = jnp.mean(emb, axis=1)                                  # (B, 50)

    tb = _batch_tile(B)
    n_chunks = -(-B // tb)
    bpad = n_chunks * tb
    needs_mask = bpad != B

    img_p = img if not needs_mask else (
        jnp.zeros((bpad, 2048), jnp.bfloat16).at[:B].set(img))
    txt_p = jnp.zeros((bpad, 128), jnp.float32).at[:B, :50].set(txt)

    kernel = functools.partial(_meme_kernel, n_real=B, needs_mask=needs_mask)

    out = pl.pallas_call(
        kernel,
        out_shape=jax.ShapeDtypeStruct((bpad, 1), jnp.float32),
        grid=(n_chunks,),
        in_specs=[
            pl.BlockSpec((tb, 2048), lambda i: (i, 0)),          # img chunk (pipelined)
            pl.BlockSpec((tb, 128), lambda i: (i, 0)),           # txt chunk (pipelined)
            pl.BlockSpec((2048, 128), lambda i: (0, 0)),         # w1 (resident)
            pl.BlockSpec((256, 512), lambda i: (0, 0)),          # w2
            pl.BlockSpec((512, 256), lambda i: (0, 0)),          # w3
            pl.BlockSpec((1, 256), lambda i: (0, 0)),            # w4 row
            pl.BlockSpec((1, _PACKED_LEN), lambda i: (0, 0)),    # packed bias/gamma/beta
            pl.BlockSpec(memory_space=pltpu.MemorySpace.SMEM),   # fc4 bias scalar
        ],
        out_specs=pl.BlockSpec((bpad, 1), lambda i: (0, 0)),
        scratch_shapes=[
            pltpu.VMEM((bpad, 256), jnp.float32),                # relu(fc1|txt)
            pltpu.VMEM((1, 256), jnp.float32),                   # BN1 sum
            pltpu.VMEM((1, 256), jnp.float32),                   # BN1 sum of squares
        ],
        compiler_params=pltpu.CompilerParams(
            # TODO(synk): on v7x make this "parallel" across both TensorCores
            # with a cross-core BN1-stat reduction.
            dimension_semantics=("arbitrary",),
            vmem_limit_bytes=_vmem_limit_bytes(bpad, tb),
        ),
    )(img_p, txt_p, pp["w1p"], pp["w2p"], pp["w3p"], pp["w4p"],
      pp["vec"], pp["b4"])

    return out[:B, 0]                                            # .view([-1]) -> (B,)


if __name__ == "__main__":
    B, C, H, W = 2, 4, 16, 16     # small image batch
    S, V, E = 8, 20, 50           # seq_len, vocab, embedding dim (50 -> concat 100)

    key = jax.random.PRNGKey(0)
    k_x, k_y, k_p = jax.random.split(key, 3)

    x = jax.random.normal(k_x, (B, C, H, W), jnp.float32)
    y = jax.random.randint(k_y, (B, S), 0, V, dtype=jnp.int32)
    params = init_params(k_p, C, V, E)

    prepped = prepare_params(params)          # one-time weight prep (not per call)
    fwd = jax.jit(meme_classifier_forward)

    out = fwd(x, y, prepped)
    out = jax.block_until_ready(out)

    assert out.shape == (B,)
    assert bool(jnp.all(jnp.isfinite(out)))
    assert bool(jnp.all((out >= 0.0) & (out <= 1.0)))
    print("KERNEL_OK")
</pallas_src>

<mosaic_0001>
module attributes {stable_mosaic.version = 11 : i64} {
  func.func @_meme_kernel(%arg0: i32, %arg1: memref<8x2048xbf16, #tpu.memory_space<vmem>>, %arg2: memref<8x128xf32, #tpu.memory_space<vmem>>, %arg3: memref<2048x128xbf16, #tpu.memory_space<vmem>>, %arg4: memref<256x512xbf16, #tpu.memory_space<vmem>>, %arg5: memref<512x256xbf16, #tpu.memory_space<vmem>>, %arg6: memref<1x256xf32, #tpu.memory_space<vmem>>, %arg7: memref<1x2944xf32, #tpu.memory_space<vmem>>, %arg8: memref<1xf32, #tpu.memory_space<smem>>, %arg9: memref<8x1xf32, #tpu.memory_space<vmem>>, %arg10: memref<8x256xf32, #tpu.memory_space<vmem>>, %arg11: memref<1x256xf32, #tpu.memory_space<vmem>>, %arg12: memref<1x256xf32, #tpu.memory_space<vmem>>) attributes {dimension_semantics = [#tpu.dimension_semantics<arbitrary>], iteration_bounds = array<i64: 1>, scalar_prefetch = 0 : i64, scratch_operands = 3 : i64, tpu.core_type = #tpu.core_type<tc>, window_params = [{transform_indices = @transform_0, window_bounds = array<i64: 8, 2048>}, {transform_indices = @transform_1, window_bounds = array<i64: 8, 128>}, {pipeline_mode = #tpu.pipeline_mode<synchronous>, transform_indices = @transform_2, window_bounds = array<i64: 2048, 128>}, {pipeline_mode = #tpu.pipeline_mode<synchronous>, transform_indices = @transform_3, window_bounds = array<i64: 256, 512>}, {pipeline_mode = #tpu.pipeline_mode<synchronous>, transform_indices = @transform_4, window_bounds = array<i64: 512, 256>}, {pipeline_mode = #tpu.pipeline_mode<synchronous>, transform_indices = @transform_5, window_bounds = array<i64: 1, 256>}, {pipeline_mode = #tpu.pipeline_mode<synchronous>, transform_indices = @transform_6, window_bounds = array<i64: 1, 2944>}, {transform_indices = @transform_7, window_bounds = array<i64: 1>}, {pipeline_mode = #tpu.pipeline_mode<synchronous>, transform_indices = @transform_8, window_bounds = array<i64: 8, 1>}]} {
    %c0_i32 = arith.constant 0 : i32
    %0 = arith.cmpi eq, %arg0, %c0_i32 : i32
    %1 = arith.extui %0 : i1 to i32
    %c0_i32_0 = arith.constant 0 : i32
    %2 = arith.cmpi ne, %1, %c0_i32_0 : i32
    scf.if %2 {
      %cst_24 = arith.constant 0.000000e+00 : f32
      %43 = vector.broadcast %cst_24 : f32 to vector<1x256xf32>
      %c0_25 = arith.constant 0 : index
      %c0_26 = arith.constant 0 : index
      %44 = vector.load %arg11[%c0_25, %c0_26] : memref<1x256xf32, #tpu.memory_space<vmem>>, vector<1x256xf32>
      tpu.vector_store %arg11[%c0_25, %c0_26], %43 {strides = array<i32>} : memref<1x256xf32, #tpu.memory_space<vmem>>, vector<1x256xf32>,
      %cst_27 = arith.constant 0.000000e+00 : f32
      %45 = vector.broadcast %cst_27 : f32 to vector<1x256xf32>
      %c0_28 = arith.constant 0 : index
      %c0_29 = arith.constant 0 : index
      %46 = vector.load %arg12[%c0_28, %c0_29] : memref<1x256xf32, #tpu.memory_space<vmem>>, vector<1x256xf32>
      tpu.vector_store %arg12[%c0_28, %c0_29], %45 {strides = array<i32>} : memref<1x256xf32, #tpu.memory_space<vmem>>, vector<1x256xf32>,
    } else {
    }
    %c0 = arith.constant 0 : index
    %c0_1 = arith.constant 0 : index
    %3 = vector.load %arg1[%c0, %c0_1] : memref<8x2048xbf16, #tpu.memory_space<vmem>>, vector<8x2048xbf16>
    %c0_2 = arith.constant 0 : index
    %c0_3 = arith.constant 0 : index
    %4 = vector.load %arg3[%c0_2, %c0_3] : memref<2048x128xbf16, #tpu.memory_space<vmem>>, vector<2048x128xbf16>
    %cst = arith.constant dense<0.000000e+00> : vector<8x128xf32>
    %5 = tpu.matmul %3, %4, %cst {dimension_numbers = #tpu.dot_dimension_numbers<[1], [0], [0], [1], [0, 0, 1, 1], [], []>} : vector<8x2048xbf16>, vector<2048x128xbf16>, vector<8x128xf32> -> vector<8x128xf32>
    %c0_4 = arith.constant 0 : index
    %c0_5 = arith.constant 0 : index
    %6 = vector.load %arg7[%c0_4, %c0_5] : memref<1x2944xf32, #tpu.memory_space<vmem>>, vector<1x128xf32>
    %7 = vector.broadcast %6 : vector<1x128xf32> to vector<8x128xf32>
    %8 = arith.addf %5, %7 : vector<8x128xf32>
    %cst_6 = arith.constant 0.000000e+00 : f32
    %9 = vector.broadcast %cst_6 : f32 to vector<8x128xf32>
    %10 = arith.maximumf %8, %9 : vector<8x128xf32>
    %c0_7 = arith.constant 0 : index
    %c0_8 = arith.constant 0 : index
    %11 = vector.load %arg2[%c0_7, %c0_8] : memref<8x128xf32, #tpu.memory_space<vmem>>, vector<8x128xf32>
    %cst_9 = arith.constant 0.000000e+00 : f32
    %12 = vector.broadcast %cst_9 : f32 to vector<8x128xf32>
    %13 = arith.maximumf %11, %12 : vector<8x128xf32>
    %14 = tpu.concatenate %10, %13 in 1 : vector<8x128xf32>, vector<8x128xf32> -> vector<8x256xf32>
    %15 = tpu.iota {dimensions = array<i32: 0>} : vector<8x1xi32>
    %c8_i32 = arith.constant 8 : i32
    %16 = arith.muli %arg0, %c8_i32 : i32
    %17 = vector.broadcast %16 : i32 to vector<8x1xi32>
    %18 = arith.addi %15, %17 : vector<8x1xi32>
    %c2_i32 = arith.constant 2 : i32
    %19 = vector.broadcast %c2_i32 : i32 to vector<8x1xi32>
    %20 = arith.cmpi slt, %18, %19 : vector<8x1xi32>
    %21 = arith.extui %20 : vector<8x1xi1> to vector<8x1xi32>
    %22 = arith.sitofp %21 : vector<8x1xi32> to vector<8x1xf32>
    %23 = vector.broadcast %22 : vector<8x1xf32> to vector<8x256xf32>
    %24 = arith.mulf %14, %23 : vector<8x256xf32>
    %c0_10 = arith.constant 0 : index
    %c0_11 = arith.constant 0 : index
    %25 = vector.load %arg11[%c0_10, %c0_11] : memref<1x256xf32, #tpu.memory_space<vmem>>, vector<1x256xf32>
    %cst_12 = arith.constant dense<0.000000e+00> : vector<256xf32>
    %26 = vector.multi_reduction <add>, %24, %cst_12 [0] : vector<8x256xf32> to vector<256xf32>
    %27 = vector.shape_cast %26 : vector<256xf32> to vector<1x256xf32>
    %28 = arith.addf %25, %27 : vector<1x256xf32>
    %c0_13 = arith.constant 0 : index
    %c0_14 = arith.constant 0 : index
    %29 = vector.load %arg11[%c0_13, %c0_14] : memref<1x256xf32, #tpu.memory_space<vmem>>, vector<1x256xf32>
    tpu.vector_store %arg11[%c0_13, %c0_14], %28 {strides = array<i32>} : memref<1x256xf32, #tpu.memory_space<vmem>>, vector<1x256xf32>,
    %c0_15 = arith.constant 0 : index
    %c0_16 = arith.constant 0 : index
    %30 = vector.load %arg12[%c0_15, %c0_16] : memref<1x256xf32, #tpu.memory_space<vmem>>, vector<1x256xf32>
    %31 = arith.mulf %24, %14 : vector<8x256xf32>
    %cst_17 = arith.constant dense<0.000000e+00> : vector<256xf32>
    %32 = vector.multi_reduction <add>, %31, %cst_17 [0] : vector<8x256xf32> to vector<256xf32>
    %33 = vector.shape_cast %32 : vector<256xf32> to vector<1x256xf32>
    %34 = arith.addf %30, %33 : vector<1x256xf32>
    %c0_18 = arith.constant 0 : index
    %c0_19 = arith.constant 0 : index
    %35 = vector.load %arg12[%c0_18, %c0_19] : memref<1x256xf32, #tpu.memory_space<vmem>>, vector<1x256xf32>
    tpu.vector_store %arg12[%c0_18, %c0_19], %34 {strides = array<i32>} : memref<1x256xf32, #tpu.memory_space<vmem>>, vector<1x256xf32>,
    %c8_i32_20 = arith.constant 8 : i32
    %36 = arith.muli %arg0, %c8_i32_20 : i32
    %37 = tpu.assume_multiple %36, 8 : i32
    %38 = arith.index_cast %37 : i32 to index
    %c0_21 = arith.constant 0 : index
    %39 = vector.load %arg10[%38, %c0_21] : memref<8x256xf32, #tpu.memory_space<vmem>>, vector<8x256xf32>
    tpu.vector_store %arg10[%38, %c0_21], %14 {strides = array<i32>} : memref<8x256xf32, #tpu.memory_space<vmem>>, vector<8x256xf32>,
    %c0_i32_22 = arith.constant 0 : i32
    %40 = arith.cmpi eq, %arg0, %c0_i32_22 : i32
    %41 = arith.extui %40 : i1 to i32
    %c0_i32_23 = arith.constant 0 : i32
    %42 = arith.cmpi ne, %41, %c0_i32_23 : i32
    scf.if %42 {
      %43 = tpu.iota {dimensions = array<i32: 0>} : vector<8x1xi32>
      %c2_i32_24 = arith.constant 2 : i32
      %44 = vector.broadcast %c2_i32_24 : i32 to vector<8x1xi32>
      %45 = arith.cmpi slt, %43, %44 : vector<8x1xi32>
      %46 = arith.extui %45 : vector<8x1xi1> to vector<8x1xi32>
      %47 = arith.sitofp %46 : vector<8x1xi32> to vector<8x1xf32>
      %c0_25 = arith.constant 0 : index
      %c0_26 = arith.constant 0 : index
      %48 = vector.load %arg10[%c0_25, %c0_26] : memref<8x256xf32, #tpu.memory_space<vmem>>, vector<8x256xf32>
      %c0_27 = arith.constant 0 : index
      %c0_28 = arith.constant 0 : index
      %49 = vector.load %arg11[%c0_27, %c0_28] : memref<1x256xf32, #tpu.memory_space<vmem>>, vector<1x256xf32>
      %c0_29 = arith.constant 0 : index
      %c0_30 = arith.constant 0 : index
      %50 = vector.load %arg12[%c0_29, %c0_30] : memref<1x256xf32, #tpu.memory_space<vmem>>, vector<1x256xf32>
      %c0_31 = arith.constant 0 : index
      %c128 = arith.constant 128 : index
      %51 = vector.load %arg7[%c0_31, %c128] : memref<1x2944xf32, #tpu.memory_space<vmem>>, vector<1x256xf32>
      %c0_32 = arith.constant 0 : index
      %c384 = arith.constant 384 : index
      %52 = vector.load %arg7[%c0_32, %c384] : memref<1x2944xf32, #tpu.memory_space<vmem>>, vector<1x256xf32>
      %cst_33 = arith.constant 5.000000e-01 : f32
      %53 = vector.broadcast %cst_33 : f32 to vector<1x256xf32>
      %54 = arith.mulf %49, %53 : vector<1x256xf32>
      %cst_34 = arith.constant 5.000000e-01 : f32
      %55 = vector.broadcast %cst_34 : f32 to vector<1x256xf32>
      %56 = arith.mulf %50, %55 : vector<1x256xf32>
      %57 = arith.mulf %54, %54 : vector<1x256xf32>
      %58 = arith.subf %56, %57 : vector<1x256xf32>
      %cst_35 = arith.constant 0.000000e+00 : f32
      %59 = vector.broadcast %cst_35 : f32 to vector<1x256xf32>
      %60 = arith.maximumf %58, %59 : vector<1x256xf32>
      %cst_36 = arith.constant 9.99999974E-6 : f32
      %61 = vector.broadcast %cst_36 : f32 to vector<1x256xf32>
      %62 = arith.addf %60, %61 : vector<1x256xf32>
      %63 = math.rsqrt %62 : vector<1x256xf32>
      %64 = arith.mulf %51, %63 : vector<1x256xf32>
      %65 = arith.mulf %54, %64 : vector<1x256xf32>
      %66 = arith.subf %52, %65 : vector<1x256xf32>
      %67 = vector.broadcast %64 : vector<1x256xf32> to vector<8x256xf32>
      %68 = arith.mulf %48, %67 : vector<8x256xf32>
      %69 = vector.broadcast %66 : vector<1x256xf32> to vector<8x256xf32>
      %70 = arith.addf %68, %69 : vector<8x256xf32>
      %71 = arith.truncf %70 : vector<8x256xf32> to vector<8x256xbf16>
      %c0_37 = arith.constant 0 : index
      %c0_38 = arith.constant 0 : index
      %72 = vector.load %arg4[%c0_37, %c0_38] : memref<256x512xbf16, #tpu.memory_space<vmem>>, vector<256x512xbf16>
      %cst_39 = arith.constant dense<0.000000e+00> : vector<8x512xf32>
      %73 = tpu.matmul %71, %72, %cst_39 {dimension_numbers = #tpu.dot_dimension_numbers<[1], [0], [0], [1], [0, 0, 1, 1], [], []>} : vector<8x256xbf16>, vector<256x512xbf16>, vector<8x512xf32> -> vector<8x512xf32>
      %c0_40 = arith.constant 0 : index
      %c640 = arith.constant 640 : index
      %74 = vector.load %arg7[%c0_40, %c640] : memref<1x2944xf32, #tpu.memory_space<vmem>>, vector<1x512xf32>
      %75 = vector.broadcast %74 : vector<1x512xf32> to vector<8x512xf32>
      %76 = arith.addf %73, %75 : vector<8x512xf32>
      %cst_41 = arith.constant 0.000000e+00 : f32
      %77 = vector.broadcast %cst_41 : f32 to vector<8x512xf32>
      %78 = arith.maximumf %76, %77 : vector<8x512xf32>
      %c0_42 = arith.constant 0 : index
      %c1152 = arith.constant 1152 : index
      %79 = vector.load %arg7[%c0_42, %c1152] : memref<1x2944xf32, #tpu.memory_space<vmem>>, vector<1x512xf32>
      %c0_43 = arith.constant 0 : index
      %c1664 = arith.constant 1664 : index
      %80 = vector.load %arg7[%c0_43, %c1664] : memref<1x2944xf32, #tpu.memory_space<vmem>>, vector<1x512xf32>
      %81 = vector.broadcast %47 : vector<8x1xf32> to vector<8x512xf32>
      %82 = arith.mulf %78, %81 : vector<8x512xf32>
      %cst_44 = arith.constant dense<0.000000e+00> : vector<512xf32>
      %83 = vector.multi_reduction <add>, %82, %cst_44 [0] : vector<8x512xf32> to vector<512xf32>
      %84 = vector.shape_cast %83 : vector<512xf32> to vector<1x512xf32>
      %85 = arith.mulf %82, %78 : vector<8x512xf32>
      %cst_45 = arith.constant dense<0.000000e+00> : vector<512xf32>
      %86 = vector.multi_reduction <add>, %85, %cst_45 [0] : vector<8x512xf32> to vector<512xf32>
      %87 = vector.shape_cast %86 : vector<512xf32> to vector<1x512xf32>
      %cst_46 = arith.constant 5.000000e-01 : f32
      %88 = vector.broadcast %cst_46 : f32 to vector<1x512xf32>
      %89 = arith.mulf %84, %88 : vector<1x512xf32>
      %cst_47 = arith.constant 5.000000e-01 : f32
      %90 = vector.broadcast %cst_47 : f32 to vector<1x512xf32>
      %91 = arith.mulf %87, %90 : vector<1x512xf32>
      %92 = arith.mulf %89, %89 : vector<1x512xf32>
      %93 = arith.subf %91, %92 : vector<1x512xf32>
      %cst_48 = arith.constant 0.000000e+00 : f32
      %94 = vector.broadcast %cst_48 : f32 to vector<1x512xf32>
      %95 = arith.maximumf %93, %94 : vector<1x512xf32>
      %cst_49 = arith.constant 9.99999974E-6 : f32
      %96 = vector.broadcast %cst_49 : f32 to vector<1x512xf32>
      %97 = arith.addf %95, %96 : vector<1x512xf32>
      %98 = math.rsqrt %97 : vector<1x512xf32>
      %99 = arith.mulf %79, %98 : vector<1x512xf32>
      %100 = arith.mulf %89, %99 : vector<1x512xf32>
      %101 = arith.subf %80, %100 : vector<1x512xf32>
      %102 = vector.broadcast %99 : vector<1x512xf32> to vector<8x512xf32>
      %103 = arith.mulf %78, %102 : vector<8x512xf32>
      %104 = vector.broadcast %101 : vector<1x512xf32> to vector<8x512xf32>
      %105 = arith.addf %103, %104 : vector<8x512xf32>
      %106 = arith.truncf %105 : vector<8x512xf32> to vector<8x512xbf16>
      %c0_50 = arith.constant 0 : index
      %c0_51 = arith.constant 0 : index
      %107 = vector.load %arg5[%c0_50, %c0_51] : memref<512x256xbf16, #tpu.memory_space<vmem>>, vector<512x256xbf16>
      %cst_52 = arith.constant dense<0.000000e+00> : vector<8x256xf32>
      %108 = tpu.matmul %106, %107, %cst_52 {dimension_numbers = #tpu.dot_dimension_numbers<[1], [0], [0], [1], [0, 0, 1, 1], [], []>} : vector<8x512xbf16>, vector<512x256xbf16>, vector<8x256xf32> -> vector<8x256xf32>
      %c0_53 = arith.constant 0 : index
      %c2176 = arith.constant 2176 : index
      %109 = vector.load %arg7[%c0_53, %c2176] : memref<1x2944xf32, #tpu.memory_space<vmem>>, vector<1x256xf32>
      %110 = vector.broadcast %109 : vector<1x256xf32> to vector<8x256xf32>
      %111 = arith.addf %108, %110 : vector<8x256xf32>
      %cst_54 = arith.constant 0.000000e+00 : f32
      %112 = vector.broadcast %cst_54 : f32 to vector<8x256xf32>
      %113 = arith.maximumf %111, %112 : vector<8x256xf32>
      %c0_55 = arith.constant 0 : index
      %c2432 = arith.constant 2432 : index
      %114 = vector.load %arg7[%c0_55, %c2432] : memref<1x2944xf32, #tpu.memory_space<vmem>>, vector<1x256xf32>
      %c0_56 = arith.constant 0 : index
      %c2688 = arith.constant 2688 : index
      %115 = vector.load %arg7[%c0_56, %c2688] : memref<1x2944xf32, #tpu.memory_space<vmem>>, vector<1x256xf32>
      %116 = vector.broadcast %47 : vector<8x1xf32> to vector<8x256xf32>
      %117 = arith.mulf %113, %116 : vector<8x256xf32>
      %cst_57 = arith.constant dense<0.000000e+00> : vector<256xf32>
      %118 = vector.multi_reduction <add>, %117, %cst_57 [0] : vector<8x256xf32> to vector<256xf32>
      %119 = vector.shape_cast %118 : vector<256xf32> to vector<1x256xf32>
      %120 = arith.mulf %117, %113 : vector<8x256xf32>
      %cst_58 = arith.constant dense<0.000000e+00> : vector<256xf32>
      %121 = vector.multi_reduction <add>, %120, %cst_58 [0] : vector<8x256xf32> to vector<256xf32>
      %122 = vector.shape_cast %121 : vector<256xf32> to vector<1x256xf32>
      %cst_59 = arith.constant 5.000000e-01 : f32
      %123 = vector.broadcast %cst_59 : f32 to vector<1x256xf32>
      %124 = arith.mulf %119, %123 : vector<1x256xf32>
      %cst_60 = arith.constant 5.000000e-01 : f32
      %125 = vector.broadcast %cst_60 : f32 to vector<1x256xf32>
      %126 = arith.mulf %122, %125 : vector<1x256xf32>
      %127 = arith.mulf %124, %124 : vector<1x256xf32>
      %128 = arith.subf %126, %127 : vector<1x256xf32>
      %cst_61 = arith.constant 0.000000e+00 : f32
      %129 = vector.broadcast %cst_61 : f32 to vector<1x256xf32>
      %130 = arith.maximumf %128, %129 : vector<1x256xf32>
      %cst_62 = arith.constant 9.99999974E-6 : f32
      %131 = vector.broadcast %cst_62 : f32 to vector<1x256xf32>
      %132 = arith.addf %130, %131 : vector<1x256xf32>
      %133 = math.rsqrt %132 : vector<1x256xf32>
      %134 = arith.mulf %114, %133 : vector<1x256xf32>
      %135 = arith.mulf %124, %134 : vector<1x256xf32>
      %136 = arith.subf %115, %135 : vector<1x256xf32>
      %137 = vector.broadcast %134 : vector<1x256xf32> to vector<8x256xf32>
      %138 = arith.mulf %113, %137 : vector<8x256xf32>
      %139 = vector.broadcast %136 : vector<1x256xf32> to vector<8x256xf32>
      %140 = arith.addf %138, %139 : vector<8x256xf32>
      %c0_63 = arith.constant 0 : index
      %c0_64 = arith.constant 0 : index
      %141 = vector.load %arg6[%c0_63, %c0_64] : memref<1x256xf32, #tpu.memory_space<vmem>>, vector<1x256xf32>
      %142 = vector.broadcast %141 : vector<1x256xf32> to vector<8x256xf32>
      %143 = arith.mulf %140, %142 : vector<8x256xf32>
      %cst_65 = arith.constant dense<0.000000e+00> : vector<8xf32>
      %144 = vector.multi_reduction <add>, %143, %cst_65 [1] : vector<8x256xf32> to vector<8xf32>
      %145 = vector.shape_cast %144 : vector<8xf32> to vector<8x1xf32>
      %c0_66 = arith.constant 0 : index
      %146 = memref.load %arg8[%c0_66] : memref<1xf32, #tpu.memory_space<smem>>
      %147 = vector.broadcast %146 : f32 to vector<8x1xf32>
      %148 = arith.addf %145, %147 : vector<8x1xf32>
      %149 = math.absf %148 : vector<8x1xf32>
      %cst_67 = arith.constant 0.000000e+00 : f32
      %150 = vector.broadcast %cst_67 : f32 to vector<8x1xf32>
      %151 = arith.subf %150, %149 : vector<8x1xf32>
      %152 = math.exp %151 : vector<8x1xf32>
      %cst_68 = arith.constant 1.000000e+00 : f32
      %153 = vector.broadcast %cst_68 : f32 to vector<8x1xf32>
      %154 = arith.addf %153, %152 : vector<8x1xf32>
      %155 = tpu.reciprocal %154 {approx = true} : vector<8x1xf32> -> vector<8x1xf32>
      %cst_69 = arith.constant 1.000000e+00 : f32
      %156 = vector.broadcast %cst_69 : f32 to vector<8x1xf32>
      %157 = arith.minimumf %155, %156 : vector<8x1xf32>
      %cst_70 = arith.constant 0.000000e+00 : f32
      %158 = vector.broadcast %cst_70 : f32 to vector<8x1xf32>
      %159 = arith.cmpf oge, %148, %158 : vector<8x1xf32>
      %cst_71 = arith.constant 1.000000e+00 : f32
      %160 = vector.broadcast %cst_71 : f32 to vector<8x1xf32>
      %161 = arith.subf %160, %157 : vector<8x1xf32>
      %162 = arith.select %159, %157, %161 : vector<8x1xi1>, vector<8x1xf32>
      %c0_72 = arith.constant 0 : index
      %c0_73 = arith.constant 0 : index
      %163 = vector.load %arg9[%c0_72, %c0_73] : memref<8x1xf32, #tpu.memory_space<vmem>>, vector<8x1xf32>
      tpu.vector_store %arg9[%c0_72, %c0_73], %162 {strides = array<i32>} : memref<8x1xf32, #tpu.memory_space<vmem>>, vector<8x1xf32>,
    } else {
    }
    return
  }
  func.func @transform_0(%arg0: i32) -> (i32, i32) {
    %c0_i32 = arith.constant 0 : i32
    %c0_i32_0 = arith.constant 0 : i32
    return %arg0, %c0_i32 : i32, i32
  }
  func.func @transform_1(%arg0: i32) -> (i32, i32) {
    %c0_i32 = arith.constant 0 : i32
    %c0_i32_0 = arith.constant 0 : i32
    return %arg0, %c0_i32 : i32, i32
  }
  func.func @transform_2(%arg0: i32) -> (i32, i32) {
    %c0_i32 = arith.constant 0 : i32
    %c0_i32_0 = arith.constant 0 : i32
    %c0_i32_1 = arith.constant 0 : i32
    return %c0_i32, %c0_i32_0 : i32, i32
  }
  func.func @transform_3(%arg0: i32) -> (i32, i32) {
    %c0_i32 = arith.constant 0 : i32
    %c0_i32_0 = arith.constant 0 : i32
    %c0_i32_1 = arith.constant 0 : i32
    return %c0_i32, %c0_i32_0 : i32, i32
  }
  func.func @transform_4(%arg0: i32) -> (i32, i32) {
    %c0_i32 = arith.constant 0 : i32
    %c0_i32_0 = arith.constant 0 : i32
    %c0_i32_1 = arith.constant 0 : i32
    return %c0_i32, %c0_i32_0 : i32, i32
  }
  func.func @transform_5(%arg0: i32) -> (i32, i32) {
    %c0_i32 = arith.constant 0 : i32
    %c0_i32_0 = arith.constant 0 : i32
    %c0_i32_1 = arith.constant 0 : i32
    return %c0_i32, %c0_i32_0 : i32, i32
  }
  func.func @transform_6(%arg0: i32) -> (i32, i32) {
    %c0_i32 = arith.constant 0 : i32
    %c0_i32_0 = arith.constant 0 : i32
    %c0_i32_1 = arith.constant 0 : i32
    return %c0_i32, %c0_i32_0 : i32, i32
  }
  func.func @transform_7(%arg0: i32) -> i32 {
    %c0_i32 = arith.constant 0 : i32
    %c0_i32_0 = arith.constant 0 : i32
    return %c0_i32 : i32
  }
  func.func @transform_8(%arg0: i32) -> (i32, i32) {
    %c0_i32 = arith.constant 0 : i32
    %c0_i32_0 = arith.constant 0 : i32
    %c0_i32_1 = arith.constant 0 : i32
    return %c0_i32, %c0_i32_0 : i32, i32
  }
}

</mosaic_0001>

<bundles_post_ra>
// kernel: meme_classifier_forward.1
= control target key start
LH: loop header
LB: loop body
LE: loop exit
PB: predicated region body
PF: predicated region fallthrough
CT: control target
= control target key end

     0   :  { %14 = vsyncpa [#allocation7], 0  ;;  %s4139_s0 = inlined_call_operand.vmem [shape: bf16[8,2048], index: 0, kind: input, shape index: {}]   ;;  %s4140_s1 = inlined_call_operand.vmem [shape: f32[8,128], index: 1, kind: input, shape index: {}]   ;;  %s4141_s2 = inlined_call_operand.hbm [shape: bf16[2048,128], index: 2, kind: input, shape index: {}]   ;;  %s4142_s3 = inlined_call_operand.hbm [shape: bf16[256,512], index: 3, kind: input, shape index: {}]   ;;  %s4143_s4 = inlined_call_operand.hbm [shape: bf16[512,256], index: 4, kind: input, shape index: {}]   ;;  %s4144_s5 = inlined_call_operand.vmem [shape: f32[1,256], index: 5, kind: input, shape index: {}]   ;;  %s4145_s6 = inlined_call_operand.vmem [shape: f32[1,2944], index: 6, kind: input, shape index: {}]   ;;  %s4146_s7 = inlined_call_operand.<no memory space> [shape: f32[1], index: 7, kind: input, shape index: {}]   ;;  %s4147_s8 = inlined_call_operand.vmem [shape: f32[8,1], index: 8, kind: output, shape index: {}]  }
   0x1   :  { %15 = vsyncpa [#allocation9], 0  ;;  %s3857_s27 = smov [#allocation8]   ;;  %s3787_s9 = scalar_lea.hbm %s4142_s3, 8192 }
   0x2   :  { %s37_s28 = sshll.u32 %s3857_s27, 4  ;;  %p3788_p0 = scmp.ne.s32.totalorder %s4142_s3, %s3787_s9  ;;  %s38_s28 = int_to_ptr.vmem [resolvable:$true] %s37_s28 }
   0x3   :  { %p3791_p1 = scmp.lt.u32.totalorder %s3787_s9, %s4142_s3 }
   0x5   :  { %p3793_p2 = pnand %p3791_p1, %p3788_p0 }
   0x7   :  { %3796 = shalt.err (!%p3793_p2)
}
   0x8   :  { %s3797_s14 = scalar_lea.vmem %s38_s28, 8192  ;;  %p3802_p4 = scmp.lt.s32.totalorder %s38_s28, %s38_s28 }
   0x9   :  { %p3798_p3 = scmp.ne.s32.totalorder %s38_s28, %s3797_s14  ;;  %p3803_p5 = scmp.lt.s32.totalorder %s3797_s14, %s3797_s14 }
   0xb   :  { %p3804_p6 = por %p3803_p5, %p3802_p4 }
   0xd   :  { %p3805_p7 = pnand %p3804_p6, %p3798_p3 }
   0xf   :  { %3808 = shalt.err (!%p3805_p7)
}
  0x10   :  { %s3858_s15 = smov 256   ;;  %s3859_s16 = smov 16  }
  0x11   :  { %43 = dma.hbm_to_vmem [thread:$0]  %s4142_s3, 8192, %s38_s28, [#allocation9], %s3858_s15, %s3858_s15, %s3859_s16  }
  0x12   :  { %s3860_s19 = smov [#allocation6]   ;;  %s3809_s23 = scalar_lea.hbm %s4141_s2, 16384 }
  0x13   :  { %s25_s20 = sshll.u32 %s3860_s19, 4  ;;  %p3810_p8 = scmp.ne.s32.totalorder %s4141_s2, %s3809_s23  ;;  %s26_s20 = int_to_ptr.vmem [resolvable:$true] %s25_s20 }
  0x14   :  { %p3813_p9 = scmp.lt.u32.totalorder %s3809_s23, %s4141_s2 }
  0x16   :  { %p3815_p10 = pnand %p3813_p9, %p3810_p8 }
  0x18   :  { %3818 = shalt.err (!%p3815_p10)
}
  0x19   :  { %s3819_s29 = scalar_lea.vmem %s26_s20, 16384  ;;  %p3824_p12 = scmp.lt.s32.totalorder %s26_s20, %s26_s20 }
  0x1a   :  { %p3820_p11 = scmp.ne.s32.totalorder %s26_s20, %s3819_s29  ;;  %p3825_p13 = scmp.lt.s32.totalorder %s3819_s29, %s3819_s29 }
  0x1c   :  { %p3826_p0 = por %p3825_p13, %p3824_p12 }
  0x1e   :  { %p3827_p1 = pnand %p3826_p0, %p3820_p11 }
  0x20   :  { %3830 = shalt.err (!%p3827_p1)
}
  0x21   :  { %s3861_s3 = smov 64   ;;  %s3862_s28 = smov 4  }
  0x22   :  { %31 = dma.hbm_to_vmem [thread:$0]  %s4141_s2, 16384, %s26_s20, [#allocation7], %s3861_s3, %s3861_s3, %s3862_s28  }
  0x23   :  { %s3863_s10 = smov [#allocation10]   ;;  %s3831_s14 = scalar_lea.hbm %s4143_s4, 8192 }
  0x24   :  { %s49_s11 = sshll.u32 %s3863_s10, 4  ;;  %p3832_p2 = scmp.ne.s32.totalorder %s4143_s4, %s3831_s14  ;;  %s50_s11 = int_to_ptr.vmem [resolvable:$true] %s49_s11 }
  0x25   :  { %p3835_p3 = scmp.lt.u32.totalorder %s3831_s14, %s4143_s4 }
  0x27   :  { %p3837_p4 = pnand %p3835_p3, %p3832_p2 }
  0x29   :  { %3840 = shalt.err (!%p3837_p4)
}
  0x2a   :  { %s3841_s19 = scalar_lea.vmem %s50_s11, 8192  ;;  %p3846_p6 = scmp.lt.s32.totalorder %s50_s11, %s50_s11 }
  0x2b   :  { %p3842_p5 = scmp.ne.s32.totalorder %s50_s11, %s3841_s19  ;;  %p3847_p7 = scmp.lt.s32.totalorder %s3841_s19, %s3841_s19 }
  0x2d   :  { %p3848_p8 = por %p3847_p7, %p3846_p6 }
  0x2f   :  { %p3849_p9 = pnand %p3848_p8, %p3842_p5 }
  0x31   :  { %3852 = shalt.err (!%p3849_p9)
}
  0x32   :  { %s3864_s2 = smov 128   ;;  %s3865_s20 = smov 8  }
  0x33   :  { %55 = dma.hbm_to_vmem [thread:$0]  %s4143_s4, 8192, %s50_s11, [#allocation9], %s3864_s2, %s3864_s2, %s3865_s20  }
  0x34   :  { %3853 = dma.done.wait [#allocation7], 16384  }
  0x35   :  { %3854 = vsyncadd [#allocation7], 4294950912 }
  0x36   :  { %3855 = dma.done.wait [#allocation9], 16384  }
  0x37   :  { %3856 = vsyncadd [#allocation9], 4294950912  ;;  %v3433_v0 = vld [vmem:[#allocation6 + $0x40] sm:$0xff]   ;;  %v3437_v4 = vld [vmem:[#allocation6 + $0x48] sm:$0xff]   ;;  %vm2955_vm2 = vcmask 7168  }
  0x38   :  { %v3434_v1 = vld [vmem:[#allocation6 + $0xc0] sm:$0xff]   ;;  %3240 = vmatprep.subr.bf16.mxu0 %v3433_v0  ;;  %v3438_v5 = vld [vmem:[#allocation6 + $0xc8] sm:$0xff]   ;;  %v3441_v8 = vld [vmem:[#allocation6 + $0x50] sm:$0xff]  }
  0x39   :  { %v3435_v2 = vld [vmem:[#allocation6] sm:$0xff]   ;;  %3262 = vmatprep.subr.bf16.mxu1 %v3434_v1  ;;  %v3439_v6 = vld [vmem:[#allocation6 + $0x8] sm:$0xff]   ;;  %v3442_v9 = vld [vmem:[#allocation6 + $0xd0] sm:$0xff]  }
  0x3a   :  { %v3436_v3 = vld [vmem:[#allocation6 + $0x80] sm:$0xff]   ;;  %3241 = vmatpush3.bf16.msra.mxu0 %v3435_v2  ;;  %v3440_v7 = vld [vmem:[#allocation6 + $0x88] sm:$0xff]   ;;  %v3443_v10 = vld [vmem:[#allocation6 + $0x10] sm:$0xff]  }
  0x3b   :  { %3263 = vmatpush3.bf16.msra.mxu1 %v3436_v3  ;;  %3242 = vmatprep.subr.bf16.mxu0 %v3437_v4  ;;  %v3444_v11 = vld [vmem:[#allocation6 + $0x90] sm:$0xff]   ;;  %v3445_v12 = vld [vmem:[#allocation6 + $0x58] sm:$0xff]   ;;  %v3449_v16 = vld [vmem:[#allocation6 + $0x60] sm:$0xff]  }
  0x3c   :  { %3264 = vmatprep.subr.bf16.mxu1 %v3438_v5  ;;  %v3446_v13 = vld [vmem:[#allocation6 + $0xd8] sm:$0xff]   ;;  %v3450_v17 = vld [vmem:[#allocation6 + $0xe0] sm:$0xff]   ;;  %v3453_v20 = vld [vmem:[#allocation6 + $0x68] sm:$0xff]  }
  0x3d   :  { %v3447_v14 = vld [vmem:[#allocation6 + $0x18] sm:$0xff]   ;;  %v3451_v18 = vld [vmem:[#allocation6 + $0x20] sm:$0xff]   ;;  %v3454_v21 = vld [vmem:[#allocation6 + $0xe8] sm:$0xff]  }
  0x3e   :  { %3243 = vmatpush3.bf16.msra.mxu0 %v3439_v6  ;;  %v3448_v15 = vld [vmem:[#allocation6 + $0x98] sm:$0xff]   ;;  %v3452_v19 = vld [vmem:[#allocation6 + $0xa0] sm:$0xff]   ;;  %v3455_v22 = vld [vmem:[#allocation6 + $0x28] sm:$0xff]  }
  0x3f   :  { %3265 = vmatpush3.bf16.msra.mxu1 %v3440_v7  ;;  %3244 = vmatprep.subr.bf16.mxu0 %v3441_v8  ;;  %v3456_v23 = vld [vmem:[#allocation6 + $0xa8] sm:$0xff]   ;;  %v3457_v24 = vld [vmem:[#allocation6 + $0x70] sm:$0xff]   ;;  %v3461_v28 = vld [vmem:[#allocation6 + $0x78] sm:$0xff]  }
  0x40   :  { %3266 = vmatprep.subr.bf16.mxu1 %v3442_v9  ;;  %v3458_v25 = vld [vmem:[#allocation6 + $0xf0] sm:$0xff]   ;;  %v3462_v29 = vld [vmem:[#allocation6 + $0xf8] sm:$0xff]   ;;  %v83_v33 = vld [vmem:[%s4139_s0 + $0x8] sm:$0xff] }
  0x41   :  { %v3459_v26 = vld [vmem:[#allocation6 + $0x30] sm:$0xff]   ;;  %v3463_v30 = vld [vmem:[#allocation6 + $0x38] sm:$0xff]   ;;  %v2968_v36 = vcombine.low %v83_v33, %v83_v33  ;;  %v2969_v37 = vcombine.high %v83_v33, %v83_v33  ;;  %v3469_v38 = vld [vmem:[#allocation6 + $0x140] sm:$0xff]  }
  0x42   :  { %3245 = vmatpush3.bf16.msra.mxu0 %v3443_v10  ;;  %v3460_v27 = vld [vmem:[#allocation6 + $0xb0] sm:$0xff]   ;;  %v3464_v31 = vld [vmem:[#allocation6 + $0xb8] sm:$0xff]   ;;  %v3470_v39 = vld [vmem:[#allocation6 + $0x1c0] sm:$0xff]  }
  0x43   :  { %3267 = vmatpush3.bf16.msra.mxu1 %v3444_v11  ;;  %3246 = vmatprep.subr.bf16.mxu0 %v3445_v12  ;;  %v82_v32 = vld [vmem:[%s4139_s0] sm:$0xff]  ;;  %v3473_v42 = vld [vmem:[#allocation6 + $0x148] sm:$0xff]   ;;  %v3477_v46 = vld [vmem:[#allocation6 + $0x150] sm:$0xff]  }
  0x44   :  { %3268 = vmatprep.subr.bf16.mxu1 %v3446_v13  ;;  %v2966_v34 = vcombine.low %v82_v32, %v82_v32  ;;  %v2967_v35 = vcombine.high %v82_v32, %v82_v32  ;;  %1249 = vmatprep.mubr.bf16.mxu1 %v2969_v37  ;;  %v3471_v40 = vld [vmem:[#allocation6 + $0x100] sm:$0xff]   ;;  %v3474_v43 = vld [vmem:[#allocation6 + $0x1c8] sm:$0xff]   ;;  %v3478_v47 = vld [vmem:[#allocation6 + $0x1d0] sm:$0xff]  }
  0x45   :  { %v3472_v41 = vld [vmem:[#allocation6 + $0x180] sm:$0xff]   ;;  %v3475_v44 = vld [vmem:[#allocation6 + $0x108] sm:$0xff]   ;;  %v3479_v48 = vld [vmem:[#allocation6 + $0x110] sm:$0xff]  }
  0x46   :  { %3247 = vmatpush3.bf16.msra.mxu0 %v3447_v14  ;;  %1209 = vmatprep.mubr.bf16.mxu0 %v2967_v35  ;;  %v3476_v45 = vld [vmem:[#allocation6 + $0x188] sm:$0xff]   ;;  %v3480_v49 = vld [vmem:[#allocation6 + $0x190] sm:$0xff]   ;;  %v3481_v50 = vld [vmem:[#allocation6 + $0x158] sm:$0xff]  }
  0x47   :  { %3269 = vmatpush3.bf16.msra.mxu1 %v3448_v15  ;;  %3248 = vmatprep.subr.bf16.mxu0 %v3449_v16  ;;  %v3482_v51 = vld [vmem:[#allocation6 + $0x1d8] sm:$0xff]   ;;  %v3485_v54 = vld [vmem:[#allocation6 + $0x160] sm:$0xff]   ;;  %v3489_v58 = vld [vmem:[#allocation6 + $0x168] sm:$0xff]  }
  0x48   :  { %3270 = vmatprep.subr.bf16.mxu1 %v3450_v17  ;;  %v3483_v52 = vld [vmem:[#allocation6 + $0x118] sm:$0xff]   ;;  %v3486_v55 = vld [vmem:[#allocation6 + $0x1e0] sm:$0xff]   ;;  %v3490_v59 = vld [vmem:[#allocation6 + $0x1e8] sm:$0xff]  }
  0x49   :  { %v3484_v53 = vld [vmem:[#allocation6 + $0x198] sm:$0xff]   ;;  %v3487_v56 = vld [vmem:[#allocation6 + $0x120] sm:$0xff]   ;;  %v3491_v60 = vld [vmem:[#allocation6 + $0x128] sm:$0xff]  }
  0x4a   :  { %3249 = vmatpush3.bf16.msra.mxu0 %v3451_v18  ;;  %v3488_v57 = vld [vmem:[#allocation6 + $0x1a0] sm:$0xff]   ;;  %v3492_v61 = vld [vmem:[#allocation6 + $0x1a8] sm:$0xff]   ;;  %v3493_v62 = vld [vmem:[#allocation6 + $0x170] sm:$0xff]  }
  0x4b   :  { %3271 = vmatpush3.bf16.msra.mxu1 %v3452_v19  ;;  %3250 = vmatprep.subr.bf16.mxu0 %v3453_v20  ;;  %v3494_v63 = vld [vmem:[#allocation6 + $0x1f0] sm:$0xff]   ;;  %v3497_v2 = vld [vmem:[#allocation6 + $0x178] sm:$0xff]   ;;  %v3505_v12 = vld [vmem:[#allocation6 + $0x240] sm:$0xff]  }
  0x4c   :  { %3272 = vmatprep.subr.bf16.mxu1 %v3454_v21  ;;  %v3495_v0 = vld [vmem:[#allocation6 + $0x130] sm:$0xff]   ;;  %v3498_v3 = vld [vmem:[#allocation6 + $0x1f8] sm:$0xff]   ;;  %v3506_v13 = vld [vmem:[#allocation6 + $0x2c0] sm:$0xff]  }
  0x4d   :  { %v3496_v1 = vld [vmem:[#allocation6 + $0x1b0] sm:$0xff]   ;;  %v3499_v4 = vld [vmem:[#allocation6 + $0x138] sm:$0xff]   ;;  %v3507_v14 = vld [vmem:[#allocation6 + $0x200] sm:$0xff]  }
  0x4e   :  { %3251 = vmatpush3.bf16.msra.mxu0 %v3455_v22  ;;  %v3500_v5 = vld [vmem:[#allocation6 + $0x1b8] sm:$0xff]   ;;  %v84_v6 = vld [vmem:[%s4139_s0 + $0x10] sm:$0xff]  ;;  %v3508_v15 = vld [vmem:[#allocation6 + $0x280] sm:$0xff]  }
  0x4f   :  { %3273 = vmatpush3.bf16.msra.mxu1 %v3456_v23  ;;  %3252 = vmatprep.subr.bf16.mxu0 %v3457_v24  ;;  %v2970_v7 = vcombine.low %v84_v6, %v84_v6  ;;  %v2971_v8 = vcombine.high %v84_v6, %v84_v6  ;;  %v85_v9 = vld [vmem:[%s4139_s0 + $0x18] sm:$0xff]  ;;  %v3509_v16 = vld [vmem:[#allocation6 + $0x248] sm:$0xff]  }
  0x50   :  { %3274 = vmatprep.subr.bf16.mxu1 %v3458_v25  ;;  %v2972_v10 = vcombine.low %v85_v9, %v85_v9  ;;  %v2973_v11 = vcombine.high %v85_v9, %v85_v9  ;;  %v3510_v17 = vld [vmem:[#allocation6 + $0x2c8] sm:$0xff]   ;;  %v3513_v20 = vld [vmem:[#allocation6 + $0x250] sm:$0xff]   ;;  %v3517_v24 = vld [vmem:[#allocation6 + $0x258] sm:$0xff]  }
  0x51   :  { %v3511_v18 = vld [vmem:[#allocation6 + $0x208] sm:$0xff]   ;;  %v3514_v21 = vld [vmem:[#allocation6 + $0x2d0] sm:$0xff]   ;;  %v3518_v25 = vld [vmem:[#allocation6 + $0x2d8] sm:$0xff]  }
  0x52   :  { %3253 = vmatpush3.bf16.msra.mxu0 %v3459_v26  ;;  %v3512_v19 = vld [vmem:[#allocation6 + $0x288] sm:$0xff]   ;;  %v3515_v22 = vld [vmem:[#allocation6 + $0x210] sm:$0xff]   ;;  %v3519_v26 = vld [vmem:[#allocation6 + $0x218] sm:$0xff]  }
  0x53   :  { %3275 = vmatpush3.bf16.msra.mxu1 %v3460_v27  ;;  %3254 = vmatprep.subr.bf16.mxu0 %v3461_v28  ;;  %v3516_v23 = vld [vmem:[#allocation6 + $0x290] sm:$0xff]   ;;  %v3520_v27 = vld [vmem:[#allocation6 + $0x298] sm:$0xff]   ;;  %v3521_v28 = vld [vmem:[#allocation6 + $0x260] sm:$0xff]  }
  0x54   :  { %3276 = vmatprep.subr.bf16.mxu1 %v3462_v29  ;;  %v3522_v29 = vld [vmem:[#allocation6 + $0x2e0] sm:$0xff]   ;;  %v3525_v32 = vld [vmem:[#allocation6 + $0x268] sm:$0xff]   ;;  %v3530_v37 = vld [vmem:[#allocation6 + $0x2f0] sm:$0xff]  }
  0x55   :  { %v3526_v33 = vld [vmem:[#allocation6 + $0x2e8] sm:$0xff]  }
  0x56   :  { %3255 = vmatpush3.bf16.msra.mxu0 %v3463_v30  ;;  %v3523_v30 = vld [vmem:[#allocation6 + $0x220] sm:$0xff]   ;;  %v3528_v35 = vld [vmem:[#allocation6 + $0x2a8] sm:$0xff]  }
  0x57   :  { %3277 = vmatpush3.bf16.msra.mxu1 %v3464_v31  ;;  %3284 = vmatprep.subr.bf16.mxu0 %v3469_v38  ;;  %v3524_v31 = vld [vmem:[#allocation6 + $0x2a0] sm:$0xff]   ;;  %v3531_v38 = vld [vmem:[#allocation6 + $0x230] sm:$0xff]   ;;  %v3561_v6 = vld [vmem:[#allocation6 + $0x368] sm:$0xff]  }
  0x58   :  { %3306 = vmatprep.subr.bf16.mxu1 %v3470_v39  ;;  %v3532_v39 = vld [vmem:[#allocation6 + $0x2b0] sm:$0xff]   ;;  %v3564_v9 = vld [vmem:[#allocation6 + $0x3a8] sm:$0xff]  }
  0x59   :  { %1210 = vmatmul.mubr.bf16.vlgmr.msra.gmra.mrb[0].mxu0 %v2966_v34  ;;  %v3527_v34 = vld [vmem:[#allocation6 + $0x228] sm:$0xff]  }
  0x5a   :  { %1250 = vmatmul.mubr.bf16.vlgmr.msra.gmra.mrb[0].mxu1 %v2968_v36  ;;  %3285 = vmatpush3.bf16.msra.mxu0 %v3471_v40  ;;  %v3529_v36 = vld [vmem:[#allocation6 + $0x270] sm:$0xff]   ;;  %v3533_v40 = vld [vmem:[#allocation6 + $0x278] sm:$0xff]  }
  0x5b   :  { %3307 = vmatpush3.bf16.msra.mxu1 %v3472_v41  ;;  %3286 = vmatprep.subr.bf16.mxu0 %v3473_v42  ;;  %v3534_v41 = vld [vmem:[#allocation6 + $0x2f8] sm:$0xff]  }
  0x5c   :  { %3308 = vmatprep.subr.bf16.mxu1 %v3474_v43  ;;  %1289 = vmatprep.mubr.bf16.mxu0 %v2971_v8  ;;  %v3535_v42 = vld [vmem:[#allocation6 + $0x238] sm:$0xff]   ;;  %v3563_v8 = vld [vmem:[#allocation6 + $0x328] sm:$0xff]  }
  0x5d   :  { %1329 = vmatprep.mubr.bf16.mxu1 %v2973_v11  ;;  %v3536_v43 = vld [vmem:[#allocation6 + $0x2b8] sm:$0xff]   ;;  %v3566_v11 = vld [vmem:[#allocation6 + $0x3f0] sm:$0xff]  }
  0x5e   :  { %3287 = vmatpush3.bf16.msra.mxu0 %v3475_v44  ;;  %v86_v44 = vld [vmem:[%s4139_s0 + $0x20] sm:$0xff] }
  0x5f   :  { %3309 = vmatpush3.bf16.msra.mxu1 %v3476_v45  ;;  %3288 = vmatprep.subr.bf16.mxu0 %v3477_v46  ;;  %v87_v45 = vld [vmem:[%s4139_s0 + $0x28] sm:$0xff]  ;;  %v2974_v46 = vcombine.low %v86_v44, %v86_v44 }
  0x60   :  { %3310 = vmatprep.subr.bf16.mxu1 %v3478_v47  ;;  %v2975_v47 = vcombine.high %v86_v44, %v86_v44 }
  0x62   :  { %3289 = vmatpush3.bf16.msra.mxu0 %v3479_v48  ;;  %v2976_v48 = vcombine.low %v87_v45, %v87_v45 }
  0x63   :  { %3311 = vmatpush3.bf16.msra.mxu1 %v3480_v49  ;;  %3290 = vmatprep.subr.bf16.mxu0 %v3481_v50  ;;  %v2977_v49 = vcombine.high %v87_v45, %v87_v45  ;;  %v3541_v50 = vld [vmem:[#allocation6 + $0x340] sm:$0xff]  }
  0x64   :  { %3312 = vmatprep.subr.bf16.mxu1 %v3482_v51  ;;  %v3542_v51 = vld [vmem:[#allocation6 + $0x3c0] sm:$0xff]  }
  0x66   :  { %3291 = vmatpush3.bf16.msra.mxu0 %v3483_v52  ;;  %v3543_v52 = vld [vmem:[#allocation6 + $0x300] sm:$0xff]  }
  0x67   :  { %3313 = vmatpush3.bf16.msra.mxu1 %v3484_v53  ;;  %3292 = vmatprep.subr.bf16.mxu0 %v3485_v54  ;;  %v3544_v53 = vld [vmem:[#allocation6 + $0x380] sm:$0xff]   ;;  %v3545_v54 = vld [vmem:[#allocation6 + $0x348] sm:$0xff]  }
  0x68   :  { %3314 = vmatprep.subr.bf16.mxu1 %v3486_v55  ;;  %v3546_v55 = vld [vmem:[#allocation6 + $0x3c8] sm:$0xff]  }
  0x6a   :  { %3293 = vmatpush3.bf16.msra.mxu0 %v3487_v56  ;;  %v3547_v56 = vld [vmem:[#allocation6 + $0x308] sm:$0xff]  }
  0x6b   :  { %3315 = vmatpush3.bf16.msra.mxu1 %v3488_v57  ;;  %3294 = vmatprep.subr.bf16.mxu0 %v3489_v58  ;;  %v3548_v57 = vld [vmem:[#allocation6 + $0x388] sm:$0xff]   ;;  %v3549_v58 = vld [vmem:[#allocation6 + $0x350] sm:$0xff]  }
  0x6c   :  { %3316 = vmatprep.subr.bf16.mxu1 %v3490_v59  ;;  %v3550_v59 = vld [vmem:[#allocation6 + $0x3d0] sm:$0xff]  }
  0x6e   :  { %3295 = vmatpush3.bf16.msra.mxu0 %v3491_v60  ;;  %v3551_v60 = vld [vmem:[#allocation6 + $0x310] sm:$0xff]  }
  0x6f   :  { %3317 = vmatpush3.bf16.msra.mxu1 %v3492_v61  ;;  %3296 = vmatprep.subr.bf16.mxu0 %v3493_v62  ;;  %v3552_v61 = vld [vmem:[#allocation6 + $0x390] sm:$0xff]   ;;  %v3553_v62 = vld [vmem:[#allocation6 + $0x358] sm:$0xff]  }
  0x70   :  { %3318 = vmatprep.subr.bf16.mxu1 %v3494_v63  ;;  %v3554_v63 = vld [vmem:[#allocation6 + $0x3d8] sm:$0xff]  }
  0x72   :  { %3297 = vmatpush3.bf16.msra.mxu0 %v3495_v0  ;;  %v3555_v0 = vld [vmem:[#allocation6 + $0x318] sm:$0xff]  }
  0x73   :  { %3319 = vmatpush3.bf16.msra.mxu1 %v3496_v1  ;;  %3298 = vmatprep.subr.bf16.mxu0 %v3497_v2  ;;  %v3556_v1 = vld [vmem:[#allocation6 + $0x398] sm:$0xff]   ;;  %v3557_v2 = vld [vmem:[#allocation6 + $0x360] sm:$0xff]  }
  0x74   :  { %3320 = vmatprep.subr.bf16.mxu1 %v3498_v3  ;;  %v3558_v3 = vld [vmem:[#allocation6 + $0x3e0] sm:$0xff]  }
  0x76   :  { %3299 = vmatpush3.bf16.msra.mxu0 %v3499_v4  ;;  %v3559_v4 = vld [vmem:[#allocation6 + $0x320] sm:$0xff]  }
  0x77   :  { %3321 = vmatpush3.bf16.msra.mxu1 %v3500_v5  ;;  %3328 = vmatprep.subr.bf16.mxu0 %v3505_v12  ;;  %v3560_v5 = vld [vmem:[#allocation6 + $0x3a0] sm:$0xff]   ;;  %v3567_v12 = vld [vmem:[#allocation6 + $0x330] sm:$0xff]  }
  0x78   :  { %3350 = vmatprep.subr.bf16.mxu1 %v3506_v13  ;;  %v3568_v13 = vld [vmem:[#allocation6 + $0x3b0] sm:$0xff]  }
  0x79   :  { %1290 = vmatmul.mubr.bf16.vlgmr.msra.gmra.mrb[4].mxu0 %v2970_v7  ;;  %v3562_v7 = vld [vmem:[#allocation6 + $0x3e8] sm:$0xff]  }
  0x7a   :  { %1330 = vmatmul.mubr.bf16.vlgmr.msra.gmra.mrb[4].mxu1 %v2972_v10  ;;  %3329 = vmatpush3.bf16.msra.mxu0 %v3507_v14  ;;  %v3565_v10 = vld [vmem:[#allocation6 + $0x370] sm:$0xff]   ;;  %v3569_v14 = vld [vmem:[#allocation6 + $0x378] sm:$0xff]  }
  0x7b   :  { %3351 = vmatpush3.bf16.msra.mxu1 %v3508_v15  ;;  %3330 = vmatprep.subr.bf16.mxu0 %v3509_v16  ;;  %v3570_v15 = vld [vmem:[#allocation6 + $0x3f8] sm:$0xff]  }
  0x7c   :  { %3352 = vmatprep.subr.bf16.mxu1 %v3510_v17  ;;  %1369 = vmatprep.mubr.bf16.mxu0 %v2975_v47  ;;  %v3571_v16 = vld [vmem:[#allocation6 + $0x338] sm:$0xff]  }
  0x7d   :  { %1409 = vmatprep.mubr.bf16.mxu1 %v2977_v49  ;;  %v3572_v17 = vld [vmem:[#allocation6 + $0x3b8] sm:$0xff]  }
  0x7e   :  { %3331 = vmatpush3.bf16.msra.mxu0 %v3511_v18  ;;  %v88_v18 = vld [vmem:[%s4139_s0 + $0x30] sm:$0xff] }
  0x7f   :  { %3353 = vmatpush3.bf16.msra.mxu1 %v3512_v19  ;;  %3332 = vmatprep.subr.bf16.mxu0 %v3513_v20  ;;  %v89_v19 = vld [vmem:[%s4139_s0 + $0x38] sm:$0xff]  ;;  %v2978_v20 = vcombine.low %v88_v18, %v88_v18 }
  0x80   :  { %3354 = vmatprep.subr.bf16.mxu1 %v3514_v21  ;;  %v2979_v21 = vcombine.high %v88_v18, %v88_v18  ;;  %v3622_v18 = vld [vmem:[#allocation8 + $0x1e0] ss:$16 sps:$4 sm:$0xff]  }
  0x82   :  { %3333 = vmatpush3.bf16.msra.mxu0 %v3515_v22  ;;  %v2980_v22 = vcombine.low %v89_v19, %v89_v19 }
  0x83   :  { %3355 = vmatpush3.bf16.msra.mxu1 %v3516_v23  ;;  %3334 = vmatprep.subr.bf16.mxu0 %v3517_v24  ;;  %v2981_v23 = vcombine.high %v89_v19, %v89_v19  ;;  %v76_v24 = vlaneseq }
  0x84   :  { %3356 = vmatprep.subr.bf16.mxu1 %v3518_v25 }
  0x85   :  { %vm3974_vm0 = vcmp.lt.s32.totalorder %v76_v24, 256 }
  0x86   :  { %3335 = vmatpush3.bf16.msra.mxu0 %v3519_v26  ;;  %v3866_v26 = vmov 0.0  }
  0x87   :  { %3357 = vmatpush3.bf16.msra.mxu1 %v3520_v27  ;;  %3336 = vmatprep.subr.bf16.mxu0 %v3521_v28  ;;  %80 = vst.msk [vmem:[#allocation3] sm:$0x3] %vm3974_vm0, %v3866_v26  ;;  %81 = vst.msk [vmem:[#allocation4] sm:$0x3] %vm3974_vm0, %v3866_v26  ;;  %v3579_v27 = vld [vmem:[#allocation8 + $0x4] ss:$16 sps:$4 sm:$0xff]  }
  0x88   :  { %3358 = vmatprep.subr.bf16.mxu1 %v3522_v29  ;;  %v3577_v28 = vld [vmem:[#allocation8] ss:$16 sps:$4 sm:$0xff]   ;;  %v3582_v29 = vld [vmem:[#allocation8 + $0x24] ss:$16 sps:$4 sm:$0xff]  }
  0x8a   :  { %3337 = vmatpush3.bf16.msra.mxu0 %v3523_v30  ;;  %v3580_v30 = vld [vmem:[#allocation8 + $0x20] ss:$16 sps:$4 sm:$0xff]  }
  0x8b   :  { %3359 = vmatpush3.bf16.msra.mxu1 %v3524_v31  ;;  %3338 = vmatprep.subr.bf16.mxu0 %v3525_v32  ;;  %v3585_v31 = vld [vmem:[#allocation8 + $0x44] ss:$16 sps:$4 sm:$0xff]   ;;  %v3583_v32 = vld [vmem:[#allocation8 + $0x40] ss:$16 sps:$4 sm:$0xff]  }
  0x8c   :  { %3360 = vmatprep.subr.bf16.mxu1 %v3526_v33  ;;  %v3588_v33 = vld [vmem:[#allocation8 + $0x64] ss:$16 sps:$4 sm:$0xff]  }
  0x8e   :  { %3339 = vmatpush3.bf16.msra.mxu0 %v3527_v34  ;;  %v3586_v34 = vld [vmem:[#allocation8 + $0x60] ss:$16 sps:$4 sm:$0xff]  }
  0x8f   :  { %3361 = vmatpush3.bf16.msra.mxu1 %v3528_v35  ;;  %3340 = vmatprep.subr.bf16.mxu0 %v3529_v36  ;;  %v3591_v35 = vld [vmem:[#allocation8 + $0x84] ss:$16 sps:$4 sm:$0xff]   ;;  %v3589_v36 = vld [vmem:[#allocation8 + $0x80] ss:$16 sps:$4 sm:$0xff]  }
  0x90   :  { %3362 = vmatprep.subr.bf16.mxu1 %v3530_v37  ;;  %v3594_v37 = vld [vmem:[#allocation8 + $0xa4] ss:$16 sps:$4 sm:$0xff]  }
  0x92   :  { %3341 = vmatpush3.bf16.msra.mxu0 %v3531_v38  ;;  %v3592_v38 = vld [vmem:[#allocation8 + $0xa0] ss:$16 sps:$4 sm:$0xff]  }
  0x93   :  { %3363 = vmatpush3.bf16.msra.mxu1 %v3532_v39  ;;  %3342 = vmatprep.subr.bf16.mxu0 %v3533_v40 }
  0x94   :  { %3364 = vmatprep.subr.bf16.mxu1 %v3534_v41  ;;  %v2965_v41 = vld [vmem:[%s4145_s6] ss:$0 sm:$0xff] }
  0x96   :  { %3343 = vmatpush3.bf16.msra.mxu0 %v3535_v42 }
  0x97   :  { %3365 = vmatpush3.bf16.msra.mxu1 %v3536_v43  ;;  %3372 = vmatprep.subr.bf16.mxu0 %v3541_v50 }
  0x98   :  { %3394 = vmatprep.subr.bf16.mxu1 %v3542_v51  ;;  %v3595_v51 = vld [vmem:[#allocation8 + $0xc0] ss:$16 sps:$4 sm:$0xff]  }
  0x99   :  { %1370 = vmatmul.mubr.bf16.vlgmr.msra.gmra.mrb[8].mxu0 %v2974_v46 }
  0x9a   :  { %1410 = vmatmul.mubr.bf16.vlgmr.msra.gmra.mrb[8].mxu1 %v2976_v48  ;;  %3373 = vmatpush3.bf16.msra.mxu0 %v3543_v52  ;;  %v3597_v48 = vld [vmem:[#allocation8 + $0xc4] ss:$16 sps:$4 sm:$0xff]  }
  0x9b   :  { %3395 = vmatpush3.bf16.msra.mxu1 %v3544_v53  ;;  %3374 = vmatprep.subr.bf16.mxu0 %v3545_v54  ;;  %v3600_v54 = vld [vmem:[#allocation8 + $0xe4] ss:$16 sps:$4 sm:$0xff]  }
  0x9c   :  { %3396 = vmatprep.subr.bf16.mxu1 %v3546_v55  ;;  %1449 = vmatprep.mubr.bf16.mxu0 %v2979_v21  ;;  %v3598_v55 = vld [vmem:[#allocation8 + $0xe0] ss:$16 sps:$4 sm:$0xff]  }
  0x9d   :  { %1489 = vmatprep.mubr.bf16.mxu1 %v2981_v23 }
  0x9e   :  { %3375 = vmatpush3.bf16.msra.mxu0 %v3547_v56  ;;  %v3603_v56 = vld [vmem:[#allocation8 + $0x104] ss:$16 sps:$4 sm:$0xff]  }
  0x9f   :  { %3397 = vmatpush3.bf16.msra.mxu1 %v3548_v57  ;;  %3376 = vmatprep.subr.bf16.mxu0 %v3549_v58  ;;  %v3601_v57 = vld [vmem:[#allocation8 + $0x100] ss:$16 sps:$4 sm:$0xff]   ;;  %v3606_v58 = vld [vmem:[#allocation8 + $0x124] ss:$16 sps:$4 sm:$0xff]  }
  0xa0   :  { %3398 = vmatprep.subr.bf16.mxu1 %v3550_v59  ;;  %v3604_v59 = vld [vmem:[#allocation8 + $0x120] ss:$16 sps:$4 sm:$0xff]  }
  0xa2   :  { %3377 = vmatpush3.bf16.msra.mxu0 %v3551_v60  ;;  %v3609_v60 = vld [vmem:[#allocation8 + $0x144] ss:$16 sps:$4 sm:$0xff]  }
  0xa3   :  { %3399 = vmatpush3.bf16.msra.mxu1 %v3552_v61  ;;  %3378 = vmatprep.subr.bf16.mxu0 %v3553_v62  ;;  %v3607_v61 = vld [vmem:[#allocation8 + $0x140] ss:$16 sps:$4 sm:$0xff]   ;;  %v3612_v62 = vld [vmem:[#allocation8 + $0x164] ss:$16 sps:$4 sm:$0xff]  }
  0xa4   :  { %3400 = vmatprep.subr.bf16.mxu1 %v3554_v63  ;;  %v3610_v63 = vld [vmem:[#allocation8 + $0x160] ss:$16 sps:$4 sm:$0xff]  }
  0xa6   :  { %3379 = vmatpush3.bf16.msra.mxu0 %v3555_v0  ;;  %v3615_v0 = vld [vmem:[#allocation8 + $0x184] ss:$16 sps:$4 sm:$0xff]  }
  0xa7   :  { %3401 = vmatpush3.bf16.msra.mxu1 %v3556_v1  ;;  %3380 = vmatprep.subr.bf16.mxu0 %v3557_v2  ;;  %v3613_v1 = vld [vmem:[#allocation8 + $0x180] ss:$16 sps:$4 sm:$0xff]   ;;  %v3618_v2 = vld [vmem:[#allocation8 + $0x1a4] ss:$16 sps:$4 sm:$0xff]  }
  0xa8   :  { %3402 = vmatprep.subr.bf16.mxu1 %v3558_v3  ;;  %v3616_v3 = vld [vmem:[#allocation8 + $0x1a0] ss:$16 sps:$4 sm:$0xff]  }
  0xaa   :  { %3381 = vmatpush3.bf16.msra.mxu0 %v3559_v4 }
  0xab   :  { %3403 = vmatpush3.bf16.msra.mxu1 %v3560_v5  ;;  %3382 = vmatprep.subr.bf16.mxu0 %v3561_v6 }
  0xac   :  { %3404 = vmatprep.subr.bf16.mxu1 %v3562_v7 }
  0xae   :  { %3383 = vmatpush3.bf16.msra.mxu0 %v3563_v8  ;;  %v3621_v8 = vld [vmem:[#allocation8 + $0x1c4] ss:$16 sps:$4 sm:$0xff]  }
  0xaf   :  { %3405 = vmatpush3.bf16.msra.mxu1 %v3564_v9  ;;  %3384 = vmatprep.subr.bf16.mxu0 %v3565_v10 }
  0xb0   :  { %3406 = vmatprep.subr.bf16.mxu1 %v3566_v11 }
  0xb2   :  { %3385 = vmatpush3.bf16.msra.mxu0 %v3567_v12 }
  0xb3   :  { %3407 = vmatpush3.bf16.msra.mxu1 %v3568_v13  ;;  %3386 = vmatprep.subr.bf16.mxu0 %v3569_v14  ;;  %v3619_v13 = vld [vmem:[#allocation8 + $0x1c0] ss:$16 sps:$4 sm:$0xff]  }
  0xb4   :  { %3408 = vmatprep.subr.bf16.mxu1 %v3570_v15 }
  0xb6   :  { %3387 = vmatpush3.bf16.msra.mxu0 %v3571_v16  ;;  %v3624_v16 = vld [vmem:[#allocation8 + $0x1e4] ss:$16 sps:$4 sm:$0xff]  }
  0xb7   :  { %3409 = vmatpush3.bf16.msra.mxu1 %v3572_v17 }
  0xb8   :  { %2045 = vmatprep.subr.bf16.mxu1 %v3579_v27 }
  0xb9   :  { %1450 = vmatmul.mubr.bf16.vlgmr.msra.gmra.mrb[12].mxu0 %v2978_v20  ;;  %v3627_v20 = vld [vmem:[#allocation8 + $0xc] ss:$16 sps:$4 sm:$0xff]  }
  0xba   :  { %1490 = vmatmul.mubr.bf16.vlgmr.msra.gmra.mrb[12].mxu1 %v2980_v22 }
  0xbb   :  { %2046 = vmatpush1.bf16.msra.mxu1 %v3577_v28 }
  0xbc   :  { %2047 = vmatprep.subr.bf16.mxu1 %v3582_v29 }
  0xbf   :  { %2048 = vmatpush1.bf16.msra.mxu1 %v3580_v30 }
  0xc0   :  { %2049 = vmatprep.subr.bf16.mxu1 %v3585_v31 }
  0xc3   :  { %2050 = vmatpush1.bf16.msra.mxu1 %v3583_v32 }
  0xc4   :  { %2051 = vmatprep.subr.bf16.mxu1 %v3588_v33 }
  0xc7   :  { %2052 = vmatpush1.bf16.msra.mxu1 %v3586_v34 }
  0xc8   :  { %2053 = vmatprep.subr.bf16.mxu1 %v3591_v35 }
  0xcb   :  { %2054 = vmatpush1.bf16.msra.mxu1 %v3589_v36  ;;  %v3988_v36 = vshrl.u32 %v76_v24, 7 }
  0xcc   :  { %2055 = vmatprep.subr.bf16.mxu1 %v3594_v37  ;;  %v1498_v37 = vld [vmem:[%s4140_s1] sm:$0xff] }
  0xcd   :  { %vm1505_vm1 = vcmp.lt.s32.totalorder %v3988_v36, 2 }
  0xcf   :  { %2056 = vmatpush1.bf16.msra.mxu1 %v3592_v38  ;;  %v3994_v38 = vmax.f32 %v1498_v37, 0.0 }
  0xd0   :  { %2057 = vmatprep.subr.bf16.mxu1 %v3597_v48 }
  0xd3   :  { %2058 = vmatpush1.bf16.msra.mxu1 %v3595_v51 }
  0xd4   :  { %2059 = vmatprep.subr.bf16.mxu1 %v3600_v54 }
  0xd7   :  { %2060 = vmatpush1.bf16.msra.mxu1 %v3598_v55 }
  0xd8   :  { %2061 = vmatprep.subr.bf16.mxu1 %v3603_v56 }
  0xdb   :  { %2062 = vmatpush1.bf16.msra.mxu1 %v3601_v57 }
  0xdc   :  { %2063 = vmatprep.subr.bf16.mxu1 %v3606_v58 }
  0xdf   :  { %2064 = vmatpush1.bf16.msra.mxu1 %v3604_v59 }
  0xe0   :  { %2065 = vmatprep.subr.bf16.mxu1 %v3609_v60 }
  0xe3   :  { %2066 = vmatpush1.bf16.msra.mxu1 %v3607_v61 }
  0xe4   :  { %2067 = vmatprep.subr.bf16.mxu1 %v3612_v62 }
  0xe7   :  { %2068 = vmatpush1.bf16.msra.mxu1 %v3610_v63 }
  0xe8   :  { %2069 = vmatprep.subr.bf16.mxu1 %v3615_v0  ;;  %v3867_v0 = vmov 1966171168  }
  0xeb   :  { %2070 = vmatpush1.bf16.msra.mxu1 %v3613_v1  ;;  %v1527_v1 = vunpack.c.l.s4 %v3867_v0  ;;  %v3639_v0 = vld [vmem:[#allocation8 + $0x8c] ss:$16 sps:$4 sm:$0xff]  }
  0xec   :  { %2071 = vmatprep.subr.bf16.mxu1 %v3618_v2 }
  0xef   :  { %2072 = vmatpush1.bf16.msra.mxu1 %v3616_v3 }
  0xf0   :  { %2073 = vmatprep.subr.bf16.mxu1 %v3621_v8  ;;  %v1528_v8 = vunpack.c.0.s8 %v1527_v1  ;;  %v3637_v1 = vld [vmem:[#allocation8 + $0x88] ss:$16 sps:$4 sm:$0xff]  }
  0xf3   :  { %2074 = vmatpush1.bf16.msra.mxu1 %v3619_v13 }
  0xf4   :  { %2075 = vmatprep.subr.bf16.mxu1 %v3624_v16 }
  0xf7   :  { %2076 = vmatpush1.bf16.msra.mxu1 %v3622_v18 }
  0xf8   :  { %2086 = vmatprep.subr.bf16.mxu1 %v3627_v20 }
 0x12c   :  { %v3256_v39 = vpop.f32.mrb[0].mxu0 }
 0x12d   :  { %v3278_v40 = vpop.f32.mrb[0].mxu1  ;;  %v3257_v42 = vpop.f32.mrb[1].mxu0 }
 0x12e   :  { %v3279_v43 = vpop.f32.mrb[1].mxu1  ;;  %v3258_v44 = vadd.f32 %v3257_v42, %v3256_v39  ;;  %v3259_v46 = vpop.f32.mrb[2].mxu0  ;;  %v3997_v39 = vsel %vm1505_vm1, 1.0, %v3866_v26 }
 0x12f   :  { %v3280_v45 = vadd.f32 %v3279_v43, %v3278_v40  ;;  %v3281_v47 = vpop.f32.mrb[2].mxu1  ;;  %v3260_v49 = vpop.f32.mrb[3].mxu0  ;;  %v1509_v40 = vmul.f32 %v3997_v39, %v3994_v38 }
 0x130   :  { %v3282_v50 = vpop.f32.mrb[3].mxu1  ;;  %v1212_v52 = vadd.f32 %v3258_v44, %v2965_v41 }
 0x131   :  { %v1549_v41 = vmul.f32 %v1509_v40, %v3994_v38  ;;  %v1517_v43 = vrot.slane %v1509_v40, 4 }
 0x132   :  { %v1252_v53 = vadd.f32 %v3280_v45, %v1212_v52 }
 0x133   :  { %v1556_v47 = vrot.slane %v1549_v41, 4 }
 0x135   :  { %v1557_v55 = vadd.f32 %v1556_v47, %v1549_v41 }
 0x137   :  { %v1558_v59 = vrot.slane %v1557_v55, 2 }
 0x139   :  { %v1559_v3 = vadd.f32 %v1558_v59, %v1557_v55 }
 0x14c   :  { %v3300_v4 = vpop.f32.mrb[4].mxu0 }
 0x14d   :  { %v3322_v5 = vpop.f32.mrb[4].mxu1  ;;  %v3301_v6 = vpop.f32.mrb[5].mxu0 }
 0x14e   :  { %v3323_v7 = vpop.f32.mrb[5].mxu1  ;;  %v3302_v9 = vadd.f32 %v3301_v6, %v3300_v4  ;;  %v3303_v11 = vpop.f32.mrb[6].mxu0 }
 0x14f   :  { %v3324_v10 = vadd.f32 %v3323_v7, %v3322_v5  ;;  %v3325_v12 = vpop.f32.mrb[6].mxu1  ;;  %v3304_v14 = vpop.f32.mrb[7].mxu0 }
 0x150   :  { %v3326_v15 = vpop.f32.mrb[7].mxu1  ;;  %v1292_v17 = vadd.f32 %v3302_v9, %v1252_v53  ;;  %v1518_v53 = vadd.f32 %v1517_v43, %v1509_v40  ;;  %v1599_v43 = vld [vmem:[%s4145_s6 + $0x1] sm:$0x3] }
 0x151   :  { %v4004_v15 = vsub.s32 %v1528_v8, %v3988_v36  ;;  %v3651_v8 = vld [vmem:[#allocation8 + $0x10c] ss:$16 sps:$4 sm:$0xff]  }
 0x152   :  { %v1332_v19 = vadd.f32 %v3324_v10, %v1292_v17  ;;  %v1519_v57 = vrot.slane %v1518_v53, 2  ;;  %v1560_v10 = vrot.slane %v1559_v3, 1 }
 0x154   :  { %v1520_v61 = vadd.f32 %v1519_v57, %v1518_v53  ;;  %v1561_v17 = vadd.f32 %v1560_v10, %v1559_v3  ;;  %v3640_v3 = vld [vmem:[#allocation8 + $0xa8] ss:$16 sps:$4 sm:$0xff]   ;;  %v3654_v10 = vld [vmem:[#allocation8 + $0x12c] ss:$16 sps:$4 sm:$0xff]  }
 0x156   :  { %v1521_v5 = vrot.slane %v1520_v61, 1 }
 0x158   :  { %v1522_v12 = vadd.f32 %v1521_v5, %v1520_v61  ;;  %v3628_v61 = vld [vmem:[#allocation8 + $0x28] ss:$16 sps:$4 sm:$0xff]  }
 0x159   :  { %v3643_v5 = vld [vmem:[#allocation8 + $0xc8] ss:$16 sps:$4 sm:$0xff]  }
 0x16c   :  { %v3344_v21 = vpop.f32.mrb[8].mxu0 }
 0x16d   :  { %v3366_v22 = vpop.f32.mrb[8].mxu1  ;;  %v3345_v23 = vpop.f32.mrb[9].mxu0 }
 0x16e   :  { %v3346_v27 = vadd.f32 %v3345_v23, %v3344_v21  ;;  %v3367_v28 = vpop.f32.mrb[9].mxu1  ;;  %v3347_v29 = vpop.f32.mrb[10].mxu0 }
 0x16f   :  { %v3368_v30 = vadd.f32 %v3367_v28, %v3366_v22  ;;  %v3369_v31 = vpop.f32.mrb[10].mxu1  ;;  %v3348_v32 = vpop.f32.mrb[11].mxu0  ;;  %v1510_v22 = vld [vmem:[#allocation3] sm:$0x3]  ;;  %v1547_v28 = vld [vmem:[#allocation4] sm:$0x3] }
 0x170   :  { %v1372_v33 = vadd.f32 %v3346_v27, %v1332_v19  ;;  %v3370_v34 = vpop.f32.mrb[11].mxu1 }
 0x172   :  { %v1412_v35 = vadd.f32 %v3368_v30, %v1372_v33 }
 0x18c   :  { %v3388_v42 = vpop.f32.mrb[12].mxu0 }
 0x18d   :  { %v3410_v24 = vpop.f32.mrb[12].mxu1  ;;  %v3389_v44 = vpop.f32.mrb[13].mxu0 }
 0x18e   :  { %v3390_v45 = vadd.f32 %v3389_v44, %v3388_v42  ;;  %v3411_v46 = vpop.f32.mrb[13].mxu1  ;;  %v3391_v48 = vpop.f32.mrb[14].mxu0  ;;  %v4021_v44 = vsub.s32 1, %v3988_v36 }
 0x18f   :  { %v3412_v49 = vadd.f32 %v3411_v46, %v3410_v24  ;;  %v3413_v50 = vpop.f32.mrb[14].mxu1  ;;  %v3392_v51 = vpop.f32.mrb[15].mxu0  ;;  %v4018_v24 = vsub.s32 0, %v3988_v36  ;;  %v1600_v46 = vld [vmem:[%s4145_s6 + $0x3] sm:$0x3] }
 0x190   :  { %v1452_v52 = vadd.f32 %v3390_v45, %v1412_v35  ;;  %v3414_v26 = vpop.f32.mrb[15].mxu1 }
 0x192   :  { %v1492_v54 = vadd.f32 %v3412_v49, %v1452_v52 }
 0x194   :  { %v1497_v56 = vmax.f32 %v1492_v54, 0.0 }
 0x196   :  { %v1508_v58 = vmul.f32 %v3997_v39, %v1497_v56 }
 0x198   :  { %v1511_v60 = vrot.slane %v1508_v58, 4  ;;  %v1548_v62 = vmul.f32 %v1508_v58, %v1497_v56 }
 0x19a   :  { %v1512_v63 = vadd.f32 %v1511_v60, %v1508_v58  ;;  %v1550_v2 = vrot.slane %v1548_v62, 4  ;;  %v3625_v58 = vld [vmem:[#allocation8 + $0x8] ss:$16 sps:$4 sm:$0xff]   ;;  %v3630_v60 = vld [vmem:[#allocation8 + $0x2c] ss:$16 sps:$4 sm:$0xff]  }
 0x19c   :  { %v1513_v4 = vrot.slane %v1512_v63, 2  ;;  %v1551_v6 = vadd.f32 %v1550_v2, %v1548_v62  ;;  %v3636_v62 = vld [vmem:[#allocation8 + $0x6c] ss:$16 sps:$4 sm:$0xff]  }
 0x19d   :  { %v3642_v2 = vld [vmem:[#allocation8 + $0xac] ss:$16 sps:$4 sm:$0xff]  }
 0x19e   :  { %v1514_v7 = vadd.f32 %v1513_v4, %v1512_v63  ;;  %v1552_v9 = vrot.slane %v1551_v6, 2  ;;  %v3634_v63 = vld [vmem:[#allocation8 + $0x68] ss:$16 sps:$4 sm:$0xff]   ;;  %v3645_v4 = vld [vmem:[#allocation8 + $0xcc] ss:$16 sps:$4 sm:$0xff]  }
 0x1a0   :  { %v1515_v11 = vrot.slane %v1514_v7, 1  ;;  %v1553_v13 = vadd.f32 %v1552_v9, %v1551_v6  ;;  %v3648_v6 = vld [vmem:[#allocation8 + $0xec] ss:$16 sps:$4 sm:$0xff]   ;;  %v3649_v9 = vld [vmem:[#allocation8 + $0x108] ss:$16 sps:$4 sm:$0xff]  }
 0x1a2   :  { %v1516_v14 = vadd.f32 %v1515_v11, %v1514_v7  ;;  %v1554_v16 = vrot.slane %v1553_v13, 1  ;;  %v3646_v7 = vld [vmem:[#allocation8 + $0xe8] ss:$16 sps:$4 sm:$0xff]  }
 0x1a3   :  { %v3652_v11 = vld [vmem:[#allocation8 + $0x128] ss:$16 sps:$4 sm:$0xff]  }
 0x1a4   :  { %v1525_v18 = vcombine.low %v1516_v14, %v1522_v12  ;;  %v1555_v19 = vadd.f32 %v1554_v16, %v1553_v13  ;;  %v3657_v12 = vld [vmem:[#allocation8 + $0x14c] ss:$16 sps:$4 sm:$0xff]   ;;  %v3655_v13 = vld [vmem:[#allocation8 + $0x148] ss:$16 sps:$4 sm:$0xff]  }
 0x1a5   :  { %v3660_v14 = vld [vmem:[#allocation8 + $0x16c] ss:$16 sps:$4 sm:$0xff]   ;;  %v3658_v16 = vld [vmem:[#allocation8 + $0x168] ss:$16 sps:$4 sm:$0xff]  }
 0x1a6   :  { %v1532_v20 = vrot.slane %v1525_v18, %v4004_v15  ;;  %v1564_v21 = vcombine.low %v1555_v19, %v1561_v17  ;;  %v3663_v17 = vld [vmem:[#allocation8 + $0x18c] ss:$16 sps:$4 sm:$0xff]   ;;  %v3661_v18 = vld [vmem:[#allocation8 + $0x188] ss:$16 sps:$4 sm:$0xff]  }
 0x1a7   :  { %v3666_v19 = vld [vmem:[#allocation8 + $0x1ac] ss:$16 sps:$4 sm:$0xff]  }
 0x1a8   :  { %v1539_v23 = vrot.slane %v1532_v20, %v4004_v15  ;;  %v1571_v27 = vrot.slane %v1564_v21, %v4004_v15  ;;  %v3664_v20 = vld [vmem:[#allocation8 + $0x1a8] ss:$16 sps:$4 sm:$0xff]   ;;  %v3669_v21 = vld [vmem:[#allocation8 + $0x1cc] ss:$16 sps:$4 sm:$0xff]  }
 0x1aa   :  { %v1541_v29 = vadd.f32 %v1539_v23, %v1510_v22  ;;  %v1578_v30 = vrot.slane %v1571_v27, %v4004_v15  ;;  %v3667_v22 = vld [vmem:[#allocation8 + $0x1c8] ss:$16 sps:$4 sm:$0xff]   ;;  %v3672_v23 = vld [vmem:[#allocation8 + $0x1ec] ss:$16 sps:$4 sm:$0xff]  }
 0x1ab   :  { %v3670_v27 = vld [vmem:[#allocation8 + $0x1e8] ss:$16 sps:$4 sm:$0xff]  }
 0x1ac   :  { %1546 = vst.msk [vmem:[#allocation3] sm:$0x3] %vm3974_vm0, %v1541_v29  ;;  %v1580_v31 = vadd.f32 %v1578_v30, %v1547_v28  ;;  %v3675_v28 = vld [vmem:[#allocation10 + $0x4] ss:$8 sps:$4 sm:$0xff]   ;;  %v3673_v29 = vld [vmem:[#allocation10] ss:$8 sps:$4 sm:$0xff]  }
 0x1ad   :  { %2731 = vmatprep.subr.bf16.mxu0 %v3675_v28  ;;  %v3678_v30 = vld [vmem:[#allocation10 + $0x14] ss:$8 sps:$4 sm:$0xff]  }
 0x1ae   :  { %1581 = vst.msk [vmem:[#allocation4] sm:$0x3] %vm3974_vm0, %v1580_v31  ;;  %2732 = vmatpush1.bf16.msra.mxu0 %v3673_v29  ;;  %v3676_v31 = vld [vmem:[#allocation10 + $0x10] ss:$8 sps:$4 sm:$0xff]  }
 0x1af   :  { %2733 = vmatprep.subr.bf16.mxu0 %v3678_v30 }
 0x1b2   :  { %2734 = vmatpush1.bf16.msra.mxu0 %v3676_v31 }
 0x1b3   :  { %v1597_v32 = vld [vmem:[#allocation3] sm:$0x3] }
 0x1b4   :  { %v1601_v33 = vmul.f32 0.5, %v1597_v32  ;;  %v3681_v32 = vld [vmem:[#allocation10 + $0x24] ss:$8 sps:$4 sm:$0xff]  }
 0x1b5   :  { %v1598_v34 = vld [vmem:[#allocation4] sm:$0x3]  ;;  %2735 = vmatprep.subr.bf16.mxu0 %v3681_v32 }
 0x1b6   :  { %v1602_v35 = vmul.f32 0.5, %v1598_v34  ;;  %v1603_v37 = vmul.f32 %v1601_v33, %v1601_v33  ;;  %v3684_v34 = vld [vmem:[#allocation10 + $0x34] ss:$8 sps:$4 sm:$0xff]  }
 0x1b8   :  { %v1604_v40 = vsub.f32 %v1602_v35, %v1603_v37  ;;  %v3682_v35 = vld [vmem:[#allocation10 + $0x30] ss:$8 sps:$4 sm:$0xff]   ;;  %v3687_v37 = vld [vmem:[#allocation10 + $0x44] ss:$8 sps:$4 sm:$0xff]  }
 0x1ba   :  { %v1605_v41 = vmax.f32 %v1604_v40, 0.0  ;;  %v3685_v40 = vld [vmem:[#allocation10 + $0x40] ss:$8 sps:$4 sm:$0xff]  }
 0x1bc   :  { %v1606_v42 = vadd.f32 1e-05, %v1605_v41  ;;  %v3690_v41 = vld [vmem:[#allocation10 + $0x54] ss:$8 sps:$4 sm:$0xff]  }
 0x1be   :  { %3769 = vrsqrt.f32 %v1606_v42  ;;  %v3688_v42 = vld [vmem:[#allocation10 + $0x50] ss:$8 sps:$4 sm:$0xff]  }
 0x1c8   :  { %v3770_v25 = vpop.eup %3769 }
 0x1c9   :  { %v1608_v45 = vmul.f32 %v3770_v25, %v1599_v43  ;;  %v3693_v43 = vld [vmem:[#allocation10 + $0x64] ss:$8 sps:$4 sm:$0xff]   ;;  %v3691_v25 = vld [vmem:[#allocation10 + $0x60] ss:$8 sps:$4 sm:$0xff]  }
 0x1cb   :  { %v1615_v47 = vrot.slane %v1608_v45, %v4018_v24  ;;  %v1609_v48 = vmul.f32 %v1608_v45, %v1601_v33  ;;  %v1619_v49 = vrot.slane %v1608_v45, %v4021_v44  ;;  %v3679_v33 = vld [vmem:[#allocation10 + $0x20] ss:$8 sps:$4 sm:$0xff]   ;;  %v3696_v45 = vld [vmem:[#allocation10 + $0x74] ss:$8 sps:$4 sm:$0xff]  }
 0x1cc   :  { %2736 = vmatpush1.bf16.msra.mxu0 %v3679_v33 }
 0x1cd   :  { %v1610_v50 = vsub.f32 %v1600_v46, %v1609_v48  ;;  %v1622_v51 = vmul.f32 %v1615_v47, %v1497_v56  ;;  %v1623_v52 = vmul.f32 %v1619_v49, %v3994_v38  ;;  %v3633_v56 = vld [vmem:[#allocation8 + $0x4c] ss:$16 sps:$4 sm:$0xff]   ;;  %v3631_v38 = vld [vmem:[#allocation8 + $0x48] ss:$16 sps:$4 sm:$0xff]   ;;  %2737 = vmatprep.subr.bf16.mxu0 %v3684_v34 }
 0x1ce   :  { %v3694_v46 = vld [vmem:[#allocation10 + $0x70] ss:$8 sps:$4 sm:$0xff]   ;;  %v3699_v47 = vld [vmem:[#allocation10 + $0x84] ss:$8 sps:$4 sm:$0xff]   ;;  %v3697_v48 = vld [vmem:[#allocation10 + $0x80] ss:$8 sps:$4 sm:$0xff]  }
 0x1cf   :  { %v1632_v53 = vrot.slane %v1610_v50, %v4021_v44  ;;  %v1628_v26 = vrot.slane %v1610_v50, %v4018_v24  ;;  %v3702_v49 = vld [vmem:[#allocation10 + $0x94] ss:$8 sps:$4 sm:$0xff]   ;;  %v3700_v50 = vld [vmem:[#allocation10 + $0x90] ss:$8 sps:$4 sm:$0xff]  }
 0x1d0   :  { %2738 = vmatpush1.bf16.msra.mxu0 %v3682_v35 }
 0x1d1   :  { %v1636_v54 = vadd.f32 %v1632_v53, %v1623_v52  ;;  %v1635_v55 = vadd.f32 %v1628_v26, %v1622_v51  ;;  %2739 = vmatprep.subr.bf16.mxu0 %v3687_v37  ;;  %v3705_v51 = vld [vmem:[#allocation10 + $0xa4] ss:$8 sps:$4 sm:$0xff]   ;;  %v3703_v52 = vld [vmem:[#allocation10 + $0xa0] ss:$8 sps:$4 sm:$0xff]   ;;  %v3708_v53 = vld [vmem:[#allocation10 + $0xb4] ss:$8 sps:$4 sm:$0xff]  }
 0x1d2   :  { %v3706_v26 = vld [vmem:[#allocation10 + $0xb0] ss:$8 sps:$4 sm:$0xff]  }
 0x1d3   :  { %v1638_v57 = vpack.c.bf16 %v1636_v54, %v1636_v54  ;;  %v4031_v59 = vpack.c.bf16 %v1635_v55, %v1635_v55  ;;  %v3711_v54 = vld [vmem:[#allocation10 + $0xc4] ss:$8 sps:$4 sm:$0xff]   ;;  %v3709_v55 = vld [vmem:[#allocation10 + $0xc0] ss:$8 sps:$4 sm:$0xff]  }
 0x1d4   :  { %2740 = vmatpush1.bf16.msra.mxu0 %v3685_v40 }
 0x1d5   :  { %2077 = vmatprep.mubr.bf16.mxu1 %v1638_v57  ;;  %2741 = vmatprep.subr.bf16.mxu0 %v3690_v41 }
 0x1d6   :  { %2078 = vmatmul.mubr.bf16.vlgmr.msra.gmra.mrb[16].mxu1 %v4031_v59 }
 0x1d7   :  { %2087 = vmatpush1.bf16.msra.mxu1 %v3625_v58  ;;  %2118 = vmatprep.mubr.bf16.mxu1 %v1638_v57  ;;  %v3712_v57 = vld [vmem:[#allocation10 + $0xd0] ss:$8 sps:$4 sm:$0xff]   ;;  %v3714_v58 = vld [vmem:[#allocation10 + $0xd4] ss:$8 sps:$4 sm:$0xff]  }
 0x1d8   :  { %2088 = vmatprep.subr.bf16.mxu1 %v3630_v60  ;;  %2742 = vmatpush1.bf16.msra.mxu0 %v3688_v42  ;;  %v3717_v60 = vld [vmem:[#allocation10 + $0xe4] ss:$8 sps:$4 sm:$0xff]  }
 0x1d9   :  { %2743 = vmatprep.subr.bf16.mxu0 %v3693_v43 }
 0x1db   :  { %2089 = vmatpush1.bf16.msra.mxu1 %v3628_v61  ;;  %v3715_v61 = vld [vmem:[#allocation10 + $0xe0] ss:$8 sps:$4 sm:$0xff]  }
 0x1dc   :  { %2090 = vmatprep.subr.bf16.mxu1 %v3633_v56  ;;  %2744 = vmatpush1.bf16.msra.mxu0 %v3691_v25 }
 0x1dd   :  { %2745 = vmatprep.subr.bf16.mxu0 %v3696_v45 }
 0x1df   :  { %2091 = vmatpush1.bf16.msra.mxu1 %v3631_v38  ;;  %v3720_v38 = vld [vmem:[#allocation10 + $0xf4] ss:$8 sps:$4 sm:$0xff]  }
 0x1e0   :  { %2092 = vmatprep.subr.bf16.mxu1 %v3636_v62  ;;  %2746 = vmatpush1.bf16.msra.mxu0 %v3694_v46 }
 0x1e1   :  { %2747 = vmatprep.subr.bf16.mxu0 %v3699_v47 }
 0x1e3   :  { %2093 = vmatpush1.bf16.msra.mxu1 %v3634_v63 }
 0x1e4   :  { %2094 = vmatprep.subr.bf16.mxu1 %v3639_v0  ;;  %2748 = vmatpush1.bf16.msra.mxu0 %v3697_v48  ;;  %v3718_v0 = vld [vmem:[#allocation10 + $0xf0] ss:$8 sps:$4 sm:$0xff]  }
 0x1e5   :  { %2749 = vmatprep.subr.bf16.mxu0 %v3702_v49 }
 0x1e7   :  { %2095 = vmatpush1.bf16.msra.mxu1 %v3637_v1 }
 0x1e8   :  { %2096 = vmatprep.subr.bf16.mxu1 %v3642_v2  ;;  %2750 = vmatpush1.bf16.msra.mxu0 %v3700_v50 }
 0x1e9   :  { %2751 = vmatprep.subr.bf16.mxu0 %v3705_v51 }
 0x1eb   :  { %2097 = vmatpush1.bf16.msra.mxu1 %v3640_v3 }
 0x1ec   :  { %2098 = vmatprep.subr.bf16.mxu1 %v3645_v4  ;;  %2752 = vmatpush1.bf16.msra.mxu0 %v3703_v52 }
 0x1ed   :  { %2753 = vmatprep.subr.bf16.mxu0 %v3708_v53 }
 0x1ef   :  { %2099 = vmatpush1.bf16.msra.mxu1 %v3643_v5 }
 0x1f0   :  { %2100 = vmatprep.subr.bf16.mxu1 %v3648_v6  ;;  %2754 = vmatpush1.bf16.msra.mxu0 %v3706_v26 }
 0x1f1   :  { %2755 = vmatprep.subr.bf16.mxu0 %v3711_v54 }
 0x1f3   :  { %2101 = vmatpush1.bf16.msra.mxu1 %v3646_v7 }
 0x1f4   :  { %2102 = vmatprep.subr.bf16.mxu1 %v3651_v8  ;;  %2756 = vmatpush1.bf16.msra.mxu0 %v3709_v55 }
 0x1f5   :  { %2757 = vmatprep.subr.bf16.mxu0 %v3714_v58 }
 0x1f7   :  { %2103 = vmatpush1.bf16.msra.mxu1 %v3649_v9 }
 0x1f8   :  { %2104 = vmatprep.subr.bf16.mxu1 %v3654_v10  ;;  %2758 = vmatpush1.bf16.msra.mxu0 %v3712_v57  ;;  %v3723_v10 = vld [vmem:[#allocation10 + $0x104] ss:$8 sps:$4 sm:$0xff]  }
 0x1f9   :  { %2759 = vmatprep.subr.bf16.mxu0 %v3717_v60  ;;  %v4063_v60 = vsub.s32 2, %v3988_v36 }
 0x1fb   :  { %2105 = vmatpush1.bf16.msra.mxu1 %v3652_v11 }
 0x1fc   :  { %2106 = vmatprep.subr.bf16.mxu1 %v3657_v12  ;;  %2760 = vmatpush1.bf16.msra.mxu0 %v3715_v61  ;;  %v4066_v61 = vsub.s32 3, %v3988_v36 }
 0x1fd   :  { %2761 = vmatprep.subr.bf16.mxu0 %v3720_v38 }
 0x1ff   :  { %2107 = vmatpush1.bf16.msra.mxu1 %v3655_v13 }
 0x200   :  { %2108 = vmatprep.subr.bf16.mxu1 %v3660_v14  ;;  %2762 = vmatpush1.bf16.msra.mxu0 %v3718_v0 }
 0x201   :  { %2772 = vmatprep.subr.bf16.mxu0 %v3723_v10 }
 0x203   :  { %2109 = vmatpush1.bf16.msra.mxu1 %v3658_v16 }
 0x204   :  { %2110 = vmatprep.subr.bf16.mxu1 %v3663_v17 }
 0x207   :  { %2111 = vmatpush1.bf16.msra.mxu1 %v3661_v18 }
 0x208   :  { %2112 = vmatprep.subr.bf16.mxu1 %v3666_v19 }
 0x20b   :  { %2113 = vmatpush1.bf16.msra.mxu1 %v3664_v20 }
 0x20c   :  { %2114 = vmatprep.subr.bf16.mxu1 %v3669_v21 }
 0x20f   :  { %2115 = vmatpush1.bf16.msra.mxu1 %v3667_v22 }
 0x210   :  { %2116 = vmatprep.subr.bf16.mxu1 %v3672_v23 }
 0x213   :  { %2117 = vmatpush1.bf16.msra.mxu1 %v3670_v27 }
 0x216   :  { %2119 = vmatmul.mubr.bf16.vlgmr.msra.gmra.mrb[20].mxu1 %v4031_v59  ;;  %v4038_v59 = vld [vmem:[%s4145_s6 + $0x5] sm:$0xf] }
 0x217   :  { %v1708_v56 = vrot.slane %v4038_v59, %v4018_v24  ;;  %v1712_v62 = vrot.slane %v4038_v59, %v4021_v44  ;;  %v1720_v38 = vrot.slane %v4038_v59, %v4066_v61 }
 0x2a9   :  { %v2079_v63 = vpop.f32.mrb[16].mxu1 }
 0x2aa   :  { %v2080_v1 = vadd.f32 %v2079_v63, %v1708_v56  ;;  %v2081_v2 = vpop.f32.mrb[17].mxu1  ;;  %v1716_v56 = vrot.slane %v4038_v59, %v4063_v60 }
 0x2ab   :  { %v2082_v3 = vadd.f32 %v2081_v2, %v1712_v62  ;;  %v2083_v4 = vpop.f32.mrb[18].mxu1 }
 0x2ac   :  { %v4044_v5 = vmax.f32 %v2080_v1, 0.0  ;;  %v2084_v6 = vpop.f32.mrb[19].mxu1 }
 0x2ad   :  { %v4046_v7 = vmax.f32 %v2082_v3, 0.0 }
 0x2ae   :  { %v2133_v8 = vmul.f32 %v3997_v39, %v4044_v5 }
 0x2af   :  { %v2134_v9 = vmul.f32 %v3997_v39, %v4046_v7 }
 0x2b0   :  { %v2137_v11 = vrot.slane %v2133_v8, 4  ;;  %v2161_v12 = vmul.f32 %v2133_v8, %v4044_v5 }
 0x2b1   :  { %v2143_v13 = vrot.slane %v2134_v9, 4  ;;  %v2162_v14 = vmul.f32 %v2134_v9, %v4046_v7 }
 0x2b2   :  { %v2138_v16 = vadd.f32 %v2137_v11, %v2133_v8  ;;  %v2165_v17 = vrot.slane %v2161_v12, 4 }
 0x2b3   :  { %v2144_v18 = vadd.f32 %v2143_v13, %v2134_v9  ;;  %v2171_v19 = vrot.slane %v2162_v14, 4 }
 0x2b4   :  { %v2139_v20 = vrot.slane %v2138_v16, 2  ;;  %v2166_v21 = vadd.f32 %v2165_v17, %v2161_v12 }
 0x2b5   :  { %v2145_v22 = vrot.slane %v2144_v18, 2  ;;  %v2172_v23 = vadd.f32 %v2171_v19, %v2162_v14 }
 0x2b6   :  { %v2140_v27 = vadd.f32 %v2139_v20, %v2138_v16  ;;  %v2167_v28 = vrot.slane %v2166_v21, 2 }
 0x2b7   :  { %v2146_v29 = vadd.f32 %v2145_v22, %v2144_v18  ;;  %v2173_v30 = vrot.slane %v2172_v23, 2 }
 0x2b8   :  { %v2141_v31 = vrot.slane %v2140_v27, 1  ;;  %v2168_v32 = vadd.f32 %v2167_v28, %v2166_v21 }
 0x2b9   :  { %v2147_v33 = vrot.slane %v2146_v29, 1  ;;  %v2174_v34 = vadd.f32 %v2173_v30, %v2172_v23 }
 0x2ba   :  { %v2142_v35 = vadd.f32 %v2141_v31, %v2140_v27  ;;  %v2169_v37 = vrot.slane %v2168_v32, 1 }
 0x2bb   :  { %v2148_v40 = vadd.f32 %v2147_v33, %v2146_v29  ;;  %v2175_v41 = vrot.slane %v2174_v34, 1 }
 0x2bc   :  { %v2170_v42 = vadd.f32 %v2169_v37, %v2168_v32  ;;  %v4054_v43 = vmul.f32 0.5, %v2142_v35 }
 0x2bd   :  { %v2176_v25 = vadd.f32 %v2175_v41, %v2174_v34  ;;  %v4056_v45 = vmul.f32 0.5, %v2148_v40 }
 0x2be   :  { %v2193_v46 = vmul.f32 0.5, %v2170_v42  ;;  %v2197_v47 = vmul.f32 %v4054_v43, %v4054_v43 }
 0x2bf   :  { %v2194_v48 = vmul.f32 0.5, %v2176_v25  ;;  %v2198_v49 = vmul.f32 %v4056_v45, %v4056_v45 }
 0x2c0   :  { %v2201_v50 = vsub.f32 %v2193_v46, %v2197_v47 }
 0x2c1   :  { %v2202_v51 = vsub.f32 %v2194_v48, %v2198_v49 }
 0x2c2   :  { %v2205_v52 = vmax.f32 %v2201_v50, 0.0 }
 0x2c3   :  { %v2206_v53 = vmax.f32 %v2202_v51, 0.0 }
 0x2c4   :  { %v2209_v26 = vadd.f32 1e-05, %v2205_v52 }
 0x2c5   :  { %v2210_v54 = vadd.f32 1e-05, %v2206_v53 }
 0x2c6   :  { %3771 = vrsqrt.f32 %v2209_v26 }
 0x2c7   :  { %3773 = vrsqrt.f32 %v2210_v54 }
 0x2d0   :  { %v3772_v55 = vpop.eup %3771 }
 0x2d1   :  { %v3774_v57 = vpop.eup %3773 }
 0x2d2   :  { %v2221_v58 = vcombine.low %v3772_v55, %v3774_v57 }
 0x2e9   :  { %v2120_v62 = vpop.f32.mrb[20].mxu1 }
 0x2ea   :  { %v2121_v63 = vadd.f32 %v2120_v62, %v1716_v56  ;;  %v2122_v0 = vpop.f32.mrb[21].mxu1  ;;  %v2229_v56 = vrot.slane %v2221_v58, %v4004_v15 }
 0x2eb   :  { %v2123_v1 = vadd.f32 %v2122_v0, %v1720_v38  ;;  %v2124_v2 = vpop.f32.mrb[22].mxu1 }
 0x2ec   :  { %v4072_v3 = vmax.f32 %v2121_v63, 0.0  ;;  %v2125_v4 = vpop.f32.mrb[23].mxu1  ;;  %v2131_v63 = vld [vmem:[%s4145_s6 + $0x9] sm:$0xf] }
 0x2ed   :  { %v2130_v6 = vmax.f32 %v2123_v1, 0.0 }
 0x2ee   :  { %v2135_v8 = vmul.f32 %v3997_v39, %v4072_v3 }
 0x2ef   :  { %v2136_v36 = vmul.f32 %v3997_v39, %v2130_v6 }
 0x2f0   :  { %v2149_v9 = vrot.slane %v2135_v8, 4  ;;  %v2163_v10 = vmul.f32 %v2135_v8, %v4072_v3 }
 0x2f1   :  { %v2155_v11 = vrot.slane %v2136_v36, 4  ;;  %v2164_v12 = vmul.f32 %v2136_v36, %v2130_v6 }
 0x2f2   :  { %v2150_v59 = vadd.f32 %v2149_v9, %v2135_v8  ;;  %v2177_v13 = vrot.slane %v2163_v10, 4 }
 0x2f3   :  { %v2156_v14 = vadd.f32 %v2155_v11, %v2136_v36  ;;  %v2183_v16 = vrot.slane %v2164_v12, 4 }
 0x2f4   :  { %v2151_v17 = vrot.slane %v2150_v59, 2  ;;  %v2178_v18 = vadd.f32 %v2177_v13, %v2163_v10 }
 0x2f5   :  { %v2157_v19 = vrot.slane %v2156_v14, 2  ;;  %v2184_v20 = vadd.f32 %v2183_v16, %v2164_v12 }
 0x2f6   :  { %v2152_v21 = vadd.f32 %v2151_v17, %v2150_v59  ;;  %v2179_v22 = vrot.slane %v2178_v18, 2 }
 0x2f7   :  { %v2158_v23 = vadd.f32 %v2157_v19, %v2156_v14  ;;  %v2185_v27 = vrot.slane %v2184_v20, 2 }
 0x2f8   :  { %v2153_v28 = vrot.slane %v2152_v21, 1  ;;  %v2180_v29 = vadd.f32 %v2179_v22, %v2178_v18 }
 0x2f9   :  { %v2159_v30 = vrot.slane %v2158_v23, 1  ;;  %v2186_v31 = vadd.f32 %v2185_v27, %v2184_v20 }
 0x2fa   :  { %v2154_v32 = vadd.f32 %v2153_v28, %v2152_v21  ;;  %v2181_v33 = vrot.slane %v2180_v29, 1 }
 0x2fb   :  { %v2160_v34 = vadd.f32 %v2159_v30, %v2158_v23  ;;  %v2187_v35 = vrot.slane %v2186_v31, 1  ;;  %v3721_v30 = vld [vmem:[#allocation10 + $0x100] ss:$8 sps:$4 sm:$0xff]  }
 0x2fc   :  { %v2182_v37 = vadd.f32 %v2181_v33, %v2180_v29  ;;  %v2191_v40 = vmul.f32 0.5, %v2154_v32  ;;  %v3726_v32 = vld [vmem:[#allocation10 + $0x114] ss:$8 sps:$4 sm:$0xff]  }
 0x2fd   :  { %v2188_v41 = vadd.f32 %v2187_v35, %v2186_v31  ;;  %v2192_v42 = vmul.f32 0.5, %v2160_v34  ;;  %v3724_v34 = vld [vmem:[#allocation10 + $0x110] ss:$8 sps:$4 sm:$0xff]   ;;  %v3729_v35 = vld [vmem:[#allocation10 + $0x124] ss:$8 sps:$4 sm:$0xff]  }
 0x2fe   :  { %v2195_v25 = vmul.f32 0.5, %v2182_v37  ;;  %v2199_v46 = vmul.f32 %v2191_v40, %v2191_v40  ;;  %v3730_v37 = vld [vmem:[#allocation10 + $0x130] ss:$8 sps:$4 sm:$0xff]  }
 0x2ff   :  { %v2196_v47 = vmul.f32 0.5, %v2188_v41  ;;  %v2200_v48 = vmul.f32 %v2192_v42, %v2192_v42  ;;  %v3733_v41 = vld [vmem:[#allocation10 + $0x140] ss:$8 sps:$4 sm:$0xff]  }
 0x300   :  { %v2203_v49 = vsub.f32 %v2195_v25, %v2199_v46  ;;  %v3736_v25 = vld [vmem:[#allocation10 + $0x150] ss:$8 sps:$4 sm:$0xff]   ;;  %v3741_v46 = vld [vmem:[#allocation10 + $0x164] ss:$8 sps:$4 sm:$0xff]  }
 0x301   :  { %v2204_v50 = vsub.f32 %v2196_v47, %v2200_v48  ;;  %v3739_v47 = vld [vmem:[#allocation10 + $0x160] ss:$8 sps:$4 sm:$0xff]   ;;  %v3744_v48 = vld [vmem:[#allocation10 + $0x174] ss:$8 sps:$4 sm:$0xff]  }
 0x302   :  { %v2207_v51 = vmax.f32 %v2203_v49, 0.0  ;;  %v3742_v49 = vld [vmem:[#allocation10 + $0x170] ss:$8 sps:$4 sm:$0xff]  }
 0x303   :  { %v2208_v52 = vmax.f32 %v2204_v50, 0.0  ;;  %v3747_v50 = vld [vmem:[#allocation10 + $0x184] ss:$8 sps:$4 sm:$0xff]  }
 0x304   :  { %v2211_v53 = vadd.f32 1e-05, %v2207_v51  ;;  %v3745_v51 = vld [vmem:[#allocation10 + $0x180] ss:$8 sps:$4 sm:$0xff]  }
 0x305   :  { %v2212_v26 = vadd.f32 1e-05, %v2208_v52  ;;  %v3750_v52 = vld [vmem:[#allocation10 + $0x194] ss:$8 sps:$4 sm:$0xff]  }
 0x306   :  { %3775 = vrsqrt.f32 %v2211_v53  ;;  %v3748_v53 = vld [vmem:[#allocation10 + $0x190] ss:$8 sps:$4 sm:$0xff]  }
 0x307   :  { %3777 = vrsqrt.f32 %v2212_v26  ;;  %v3753_v26 = vld [vmem:[#allocation10 + $0x1a4] ss:$8 sps:$4 sm:$0xff]  }
 0x310   :  { %v3776_v54 = vpop.eup %3775 }
 0x311   :  { %v3778_v55 = vpop.eup %3777 }
 0x312   :  { %v2222_v57 = vcombine.low %v3776_v54, %v3778_v55  ;;  %v3751_v54 = vld [vmem:[#allocation10 + $0x1a0] ss:$8 sps:$4 sm:$0xff]   ;;  %v3756_v55 = vld [vmem:[#allocation10 + $0x1b4] ss:$8 sps:$4 sm:$0xff]  }
 0x314   :  { %v2236_v38 = vrot.slane %v2222_v57, %v4004_v15  ;;  %v3754_v57 = vld [vmem:[#allocation10 + $0x1b0] ss:$8 sps:$4 sm:$0xff]  }
 0x316   :  { %v2237_v62 = vcombine.low %v2229_v56, %v2236_v38  ;;  %v3759_v56 = vld [vmem:[#allocation10 + $0x1c4] ss:$8 sps:$4 sm:$0xff]   ;;  %v3757_v38 = vld [vmem:[#allocation10 + $0x1c0] ss:$8 sps:$4 sm:$0xff]  }
 0x318   :  { %v2244_v0 = vrot.slane %v2237_v62, %v4004_v15  ;;  %v3762_v62 = vld [vmem:[#allocation10 + $0x1d4] ss:$8 sps:$4 sm:$0xff]  }
 0x31a   :  { %v2246_v1 = vmul.f32 %v2244_v0, %v2131_v63  ;;  %v3760_v63 = vld [vmem:[#allocation10 + $0x1d0] ss:$8 sps:$4 sm:$0xff]   ;;  %v3765_v0 = vld [vmem:[#allocation10 + $0x1e4] ss:$8 sps:$4 sm:$0xff]  }
 0x31c   :  { %v2259_v2 = vrot.slane %v2246_v1, %v4063_v60  ;;  %v2263_v4 = vrot.slane %v2246_v1, %v4066_v61  ;;  %v2251_v8 = vrot.slane %v2246_v1, %v4018_v24  ;;  %v2255_v36 = vrot.slane %v2246_v1, %v4021_v44  ;;  %v3763_v1 = vld [vmem:[#allocation10 + $0x1e0] ss:$8 sps:$4 sm:$0xff]  }
 0x31e   :  { %v2270_v9 = vmul.f32 %v2259_v2, %v2191_v40  ;;  %v2271_v58 = vmul.f32 %v2263_v4, %v2192_v42  ;;  %v2305_v10 = vmul.f32 %v2263_v4, %v2130_v6  ;;  %v2268_v11 = vmul.f32 %v2251_v8, %v4054_v43  ;;  %v2132_v6 = vld [vmem:[%s4145_s6 + $0xd] sm:$0xf]  ;;  %v3738_v42 = vld [vmem:[#allocation10 + $0x154] ss:$8 sps:$4 sm:$0xff]   ;;  %v3766_v4 = vld [vmem:[#allocation10 + $0x1f0] ss:$8 sps:$4 sm:$0xff]  }
 0x31f   :  { %v2269_v12 = vmul.f32 %v2255_v36, %v4056_v45  ;;  %v2303_v59 = vmul.f32 %v2255_v36, %v4046_v7  ;;  %v2302_v13 = vmul.f32 %v2251_v8, %v4044_v5  ;;  %v2304_v14 = vmul.f32 %v2259_v2, %v4072_v3  ;;  %v3735_v40 = vld [vmem:[#allocation10 + $0x144] ss:$8 sps:$4 sm:$0xff]   ;;  %v3768_v2 = vld [vmem:[#allocation10 + $0x1f4] ss:$8 sps:$4 sm:$0xff]  }
 0x320   :  { %v2277_v16 = vcombine.low %v2270_v9, %v2271_v58  ;;  %v2399_v36 = vld [vmem:[%s4145_s6 + $0x11] sm:$0x3] }
 0x321   :  { %v2276_v17 = vcombine.low %v2268_v11, %v2269_v12  ;;  %v2404_v9 = vrot.slane %v2399_v36, %v4018_v24  ;;  %v2408_v58 = vrot.slane %v2399_v36, %v4021_v44 }
 0x322   :  { %v2291_v18 = vrot.slane %v2277_v16, %v4004_v15 }
 0x323   :  { %v2284_v19 = vrot.slane %v2276_v17, %v4004_v15 }
 0x325   :  { %v2292_v20 = vcombine.low %v2284_v19, %v2291_v18 }
 0x327   :  { %v2299_v43 = vrot.slane %v2292_v20, %v4004_v15 }
 0x329   :  { %v2301_v45 = vsub.f32 %v2132_v6, %v2299_v43 }
 0x32b   :  { %v2314_v7 = vrot.slane %v2301_v45, %v4021_v44  ;;  %v2310_v5 = vrot.slane %v2301_v45, %v4018_v24  ;;  %v2322_v3 = vrot.slane %v2301_v45, %v4066_v61  ;;  %v2318_v21 = vrot.slane %v2301_v45, %v4063_v60  ;;  %v3727_v61 = vld [vmem:[#allocation10 + $0x120] ss:$8 sps:$4 sm:$0xff]   ;;  %v3732_v60 = vld [vmem:[#allocation10 + $0x134] ss:$8 sps:$4 sm:$0xff]  }
 0x32d   :  { %v2328_v22 = vadd.f32 %v2314_v7, %v2303_v59  ;;  %v2327_v23 = vadd.f32 %v2310_v5, %v2302_v13  ;;  %v2330_v27 = vadd.f32 %v2322_v3, %v2305_v10  ;;  %v4103_v28 = vadd.f32 %v2318_v21, %v2304_v14 }
 0x32f   :  { %v2332_v29 = vpack.c.bf16 %v2328_v22, %v2328_v22  ;;  %v2331_v31 = vpack.c.bf16 %v2327_v23, %v2327_v23  ;;  %v2334_v33 = vpack.c.bf16 %v2330_v27, %v2330_v27  ;;  %v2333_v8 = vpack.c.bf16 %v4103_v28, %v4103_v28 }
 0x331   :  { %2763 = vmatprep.mubr.bf16.mxu0 %v2332_v29 }
 0x332   :  { %2764 = vmatmul.mubr.bf16.vlgmr.msra.gmra.mrb[16].mxu0 %v2331_v31 }
 0x333   :  { %2773 = vmatpush1.bf16.msra.mxu0 %v3721_v30  ;;  %2804 = vmatprep.mubr.bf16.mxu0 %v2334_v33 }
 0x334   :  { %2774 = vmatprep.subr.bf16.mxu0 %v3726_v32 }
 0x337   :  { %2775 = vmatpush1.bf16.msra.mxu0 %v3724_v34 }
 0x338   :  { %2776 = vmatprep.subr.bf16.mxu0 %v3729_v35 }
 0x33b   :  { %2777 = vmatpush1.bf16.msra.mxu0 %v3727_v61 }
 0x33c   :  { %2778 = vmatprep.subr.bf16.mxu0 %v3732_v60 }
 0x33f   :  { %2779 = vmatpush1.bf16.msra.mxu0 %v3730_v37 }
 0x340   :  { %2780 = vmatprep.subr.bf16.mxu0 %v3735_v40 }
 0x343   :  { %2781 = vmatpush1.bf16.msra.mxu0 %v3733_v41 }
 0x344   :  { %2782 = vmatprep.subr.bf16.mxu0 %v3738_v42 }
 0x347   :  { %2783 = vmatpush1.bf16.msra.mxu0 %v3736_v25 }
 0x348   :  { %2784 = vmatprep.subr.bf16.mxu0 %v3741_v46 }
 0x34b   :  { %2785 = vmatpush1.bf16.msra.mxu0 %v3739_v47 }
 0x34c   :  { %2786 = vmatprep.subr.bf16.mxu0 %v3744_v48 }
 0x34f   :  { %2787 = vmatpush1.bf16.msra.mxu0 %v3742_v49 }
 0x350   :  { %2788 = vmatprep.subr.bf16.mxu0 %v3747_v50 }
 0x353   :  { %2789 = vmatpush1.bf16.msra.mxu0 %v3745_v51 }
 0x354   :  { %2790 = vmatprep.subr.bf16.mxu0 %v3750_v52 }
 0x357   :  { %2791 = vmatpush1.bf16.msra.mxu0 %v3748_v53 }
 0x358   :  { %2792 = vmatprep.subr.bf16.mxu0 %v3753_v26 }
 0x35b   :  { %2793 = vmatpush1.bf16.msra.mxu0 %v3751_v54 }
 0x35c   :  { %2794 = vmatprep.subr.bf16.mxu0 %v3756_v55 }
 0x35f   :  { %2795 = vmatpush1.bf16.msra.mxu0 %v3754_v57 }
 0x360   :  { %2796 = vmatprep.subr.bf16.mxu0 %v3759_v56 }
 0x363   :  { %2797 = vmatpush1.bf16.msra.mxu0 %v3757_v38 }
 0x364   :  { %2798 = vmatprep.subr.bf16.mxu0 %v3762_v62 }
 0x367   :  { %2799 = vmatpush1.bf16.msra.mxu0 %v3760_v63  ;;  %v2815_v63 = vld [vmem:[%s4145_s6 + $0x13] sm:$0x3] }
 0x368   :  { %2800 = vmatprep.subr.bf16.mxu0 %v3765_v0 }
 0x36b   :  { %2801 = vmatpush1.bf16.msra.mxu0 %v3763_v1 }
 0x36c   :  { %2802 = vmatprep.subr.bf16.mxu0 %v3768_v2 }
 0x36f   :  { %2803 = vmatpush1.bf16.msra.mxu0 %v3766_v4 }
 0x372   :  { %2805 = vmatmul.mubr.bf16.vlgmr.msra.gmra.mrb[16].mxu0 %v2333_v8 }
 0x445   :  { %v2806_v10 = vpop.f32.mrb[16].mxu0 }
 0x446   :  { %v3416_v11 = vadd.f32 %v2806_v10, %v2404_v9  ;;  %v2808_v12 = vpop.f32.mrb[17].mxu0 }
 0x447   :  { %v3417_v59 = vadd.f32 %v2808_v12, %v2408_v58  ;;  %v2810_v13 = vpop.f32.mrb[18].mxu0  ;;  %v2816_v12 = vld [vmem:[%s4145_s6 + $0x15] sm:$0x3] }
 0x448   :  { %v2813_v14 = vmax.f32 %v3416_v11, 0.0  ;;  %v2811_v16 = vpop.f32.mrb[19].mxu0  ;;  %v2925_v13 = vld [vmem:[%s4144_s5] sm:$0x3] }
 0x449   :  { %v2814_v17 = vmax.f32 %v3417_v59, 0.0 }
 0x44a   :  { %v2817_v18 = vmul.f32 %v3997_v39, %v2813_v14 }
 0x44b   :  { %v2818_v19 = vmul.f32 %v3997_v39, %v2814_v17 }
 0x44c   :  { %v2819_v20 = vrot.slane %v2817_v18, 4  ;;  %v2831_v6 = vmul.f32 %v2817_v18, %v2813_v14 }
 0x44d   :  { %v2825_v43 = vrot.slane %v2818_v19, 4  ;;  %v2832_v45 = vmul.f32 %v2818_v19, %v2814_v17 }
 0x44e   :  { %v2820_v7 = vadd.f32 %v2819_v20, %v2817_v18  ;;  %v2833_v5 = vrot.slane %v2831_v6, 4 }
 0x44f   :  { %v2826_v3 = vadd.f32 %v2825_v43, %v2818_v19  ;;  %v2839_v21 = vrot.slane %v2832_v45, 4  ;;  %v2934_v19 = vrot.slane %v2925_v13, %v4021_v44 }
 0x450   :  { %v2821_v22 = vrot.slane %v2820_v7, 2  ;;  %v2834_v23 = vadd.f32 %v2833_v5, %v2831_v6 }
 0x451   :  { %v2827_v27 = vrot.slane %v2826_v3, 2  ;;  %v2840_v28 = vadd.f32 %v2839_v21, %v2832_v45 }
 0x452   :  { %v2822_v29 = vadd.f32 %v2821_v22, %v2820_v7  ;;  %v2835_v30 = vrot.slane %v2834_v23, 2 }
 0x453   :  { %v2828_v31 = vadd.f32 %v2827_v27, %v2826_v3  ;;  %v2841_v32 = vrot.slane %v2840_v28, 2 }
 0x454   :  { %v2823_v33 = vrot.slane %v2822_v29, 1  ;;  %v2836_v34 = vadd.f32 %v2835_v30, %v2834_v23 }
 0x455   :  { %v2829_v35 = vrot.slane %v2828_v31, 1  ;;  %v2842_v39 = vadd.f32 %v2841_v32, %v2840_v28 }
 0x456   :  { %v2824_v61 = vadd.f32 %v2823_v33, %v2822_v29  ;;  %v2837_v60 = vrot.slane %v2836_v34, 1 }
 0x457   :  { %v2830_v37 = vadd.f32 %v2829_v35, %v2828_v31  ;;  %v2843_v40 = vrot.slane %v2842_v39, 1 }
 0x458   :  { %v2838_v41 = vadd.f32 %v2837_v60, %v2836_v34  ;;  %v2845_v42 = vmul.f32 0.5, %v2824_v61 }
 0x459   :  { %v2844_v25 = vadd.f32 %v2843_v40, %v2842_v39  ;;  %v2846_v46 = vmul.f32 0.5, %v2830_v37 }
 0x45a   :  { %v2847_v47 = vmul.f32 0.5, %v2838_v41  ;;  %v2849_v48 = vmul.f32 %v2845_v42, %v2845_v42 }
 0x45b   :  { %v2848_v49 = vmul.f32 0.5, %v2844_v25  ;;  %v2850_v50 = vmul.f32 %v2846_v46, %v2846_v46 }
 0x45c   :  { %v2851_v51 = vsub.f32 %v2847_v47, %v2849_v48 }
 0x45d   :  { %v2852_v52 = vsub.f32 %v2848_v49, %v2850_v50 }
 0x45e   :  { %v2853_v53 = vmax.f32 %v2851_v51, 0.0 }
 0x45f   :  { %v2854_v26 = vmax.f32 %v2852_v52, 0.0 }
 0x460   :  { %v2855_v54 = vadd.f32 1e-05, %v2853_v53 }
 0x461   :  { %v2856_v55 = vadd.f32 1e-05, %v2854_v26 }
 0x462   :  { %3779 = vrsqrt.f32 %v2855_v54 }
 0x463   :  { %3781 = vrsqrt.f32 %v2856_v55 }
 0x46c   :  { %v3780_v57 = vpop.eup %3779 }
 0x46d   :  { %v3782_v56 = vpop.eup %3781 }
 0x46e   :  { %v2861_v38 = vcombine.low %v3780_v57, %v3782_v56 }
 0x470   :  { %v2868_v62 = vrot.slane %v2861_v38, %v4004_v15 }
 0x472   :  { %v2875_v0 = vrot.slane %v2868_v62, %v4004_v15 }
 0x474   :  { %v2877_v1 = vmul.f32 %v2875_v0, %v2815_v63 }
 0x476   :  { %v2886_v2 = vrot.slane %v2877_v1, %v4021_v44  ;;  %v2882_v4 = vrot.slane %v2877_v1, %v4018_v24 }
 0x478   :  { %v2890_v8 = vmul.f32 %v2886_v2, %v2846_v46  ;;  %v2911_v36 = vmul.f32 %v2886_v2, %v2814_v17  ;;  %v2889_v9 = vmul.f32 %v2882_v4, %v2845_v42  ;;  %v2910_v58 = vmul.f32 %v2882_v4, %v2813_v14 }
 0x479   :  { %v2930_v14 = vrot.slane %v2925_v13, %v4018_v24 }
 0x47a   :  { %v2893_v10 = vcombine.low %v2889_v9, %v2890_v8 }
 0x47c   :  { %v2900_v11 = vrot.slane %v2893_v10, %v4004_v15 }
 0x47e   :  { %v2907_v59 = vrot.slane %v2900_v11, %v4004_v15  ;;  %v2943_v15 = vstv %s4146_s7 }
 0x480   :  { %v2909_v16 = vsub.f32 %v2816_v12, %v2907_v59 }
 0x482   :  { %v2916_v18 = vrot.slane %v2909_v16, %v4018_v24  ;;  %v2920_v17 = vrot.slane %v2909_v16, %v4021_v44 }
 0x484   :  { %v2923_v20 = vadd.f32 %v2916_v18, %v2910_v58  ;;  %v2924_v6 = vadd.f32 %v2920_v17, %v2911_v36 }
 0x486   :  { %v2937_v43 = vmul.f32 %v2930_v14, %v2923_v20  ;;  %v2938_v45 = vmul.f32 %v2934_v19, %v2924_v6 }
 0x488   :  { %v2939_v7 = vadd.f32 %v2938_v45, %v2937_v43 }
 0x48a   :  { %2940 = vadd.xlane.f32.xlu0 %v2939_v7 }
 0x517   :  { %v2941_v5 = vpop.xlane.xlu0 %2940 }
 0x518   :  { %v2944_v3 = vadd.f32 %v2943_v15, %v2941_v5 }
 0x51a   :  { %v2945_v21 = vand.u32 2147483647, %v2944_v3  ;;  %vm2952_vm3 = vcmp.ge.f32.partialorder %v2944_v3, 0.0 }
 0x51c   :  { %v2946_v22 = vsub.f32 0.0, %v2945_v21 }
 0x51e   :  { %v2947_v23 = vmul.f32 1.442695, %v2946_v22 }
 0x520   :  { %3783 = vpow2.f32 %v2947_v23 }
 0x52a   :  { %v3784_v27 = vpop.eup %3783 }
 0x52b   :  { %v2949_v24 = vadd.f32 1.0, %v3784_v27 }
 0x52d   :  { %3785 = vrcp.f32 %v2949_v24 }
 0x537   :  { %v3786_v44 = vpop.eup %3785 }
 0x538   :  { %v2951_v28 = vmin.f32 %v3786_v44, 1.0 }
 0x53a   :  { %v2953_v29 = vsub.f32 1.0, %v2951_v28 }
 0x53c   :  { %v2954_v30 = vsel %vm2952_vm3, %v2951_v28, %v2953_v29 }
 0x53d   :  { %2956 = vst.msk [vmem:[%s4147_s8] sm:$0xff] %vm2955_vm2, %v2954_v30 }
 0x53e   :  { %2961 = vsyncpa [#allocation7], 1 }
 0x53f   :  { %2962 = vsyncpa [#allocation9], 1 }

</bundles_post_ra>
